<compile_context>
chip_gen: v6e
topology: v6e:2x2x1
jax: 0.10.0
libtpu: 0.0.40
codegen_flags: <defaults>
</compile_context>

<pallas_src>
import functools

import jax
import jax.numpy as jnp
from jax.experimental import pallas as pl
from jax.experimental.pallas import tpu as pltpu


# ----------------------------------------------------------------------------
# helpers
# ----------------------------------------------------------------------------
def _block_diag(w, reps):
    """[K, N] -> [reps*K, reps*N] block-diagonal (w repeated on the diagonal)."""
    if reps == 1:
        return w
    k, n = w.shape
    eye = jnp.eye(reps, dtype=w.dtype)
    return (eye[:, None, :, None] * w[None, :, None, :]).reshape(reps * k, reps * n)


def _choose_spatial_tile(hw, max_tile=4096):
    """Largest multiple-of-128 divisor of hw (<= max_tile); full hw otherwise."""
    if hw % 128 != 0:
        return hw  # last block dim must then equal the full array dim
    best = 128
    for t in range(128, min(hw, max_tile) + 1, 128):
        if hw % t == 0:
            best = t
    return best


# ----------------------------------------------------------------------------
# Pallas kernel: fused (matmul + bias + ReLU) x 2  -- both decoder blocks
# ----------------------------------------------------------------------------
def _fused_decoder_kernel(x_ref, w1_ref, b1_ref, w2_ref, b2_ref, o_ref):
    # x_ref : (1, Cin, ts)       f32   native-NCHW tile (channels x pixels)
    # w1_ref: (4*Cmid, Cin)      bf16  dense            rows = (a1, b1, cm)
    # b1_ref: (4*Cmid, 1)        f32
    # w2_ref: (16*Cout, 4*Cmid)  bf16  block-diag over the 4 (a1, b1) groups
    # b2_ref: (16*Cout, 1)       f32
    # o_ref : (1, 16*Cout, ts)   bf16  rows = (a1, b1, a2, b2, co)
    xb = x_ref[0].astype(w1_ref.dtype)                                  # f32 -> bf16 on-chip
    y1 = jnp.dot(w1_ref[...], xb, preferred_element_type=jnp.float32)   # (4*Cmid, ts)
    y1 = jnp.maximum(y1 + b1_ref[...], 0.0)
    y2 = jnp.dot(w2_ref[...], y1.astype(w2_ref.dtype),
                 preferred_element_type=jnp.float32)                    # (16*Cout, ts)
    y2 = jnp.maximum(y2 + b2_ref[...], 0.0)
    o_ref[0] = y2.astype(o_ref.dtype)


# ----------------------------------------------------------------------------
# AE_container forward (NCHW in / NCHW out, like the PyTorch module)
# ----------------------------------------------------------------------------
def ae_container_forward(x, params, *, max_spatial_tile=4096,
                         compute_dtype=jnp.bfloat16):
    n, cin, h, w = x.shape
    w1, b1 = params["d1_w"], params["d1_b"]   # [128, 64, 2, 2], [64]
    w2, b2 = params["d2_w"], params["d2_b"]   # [64, Cout, 2, 2], [Cout]
    cmid = w1.shape[1]
    cout = w2.shape[1]
    assert cin == w1.shape[0] and cmid == w2.shape[0]

    hw = h * w
    ts = _choose_spatial_tile(hw, max_spatial_tile)
    n_out_rows = 16 * cout                    # (a1, b1, a2, b2, co) per input pixel

    # ---- free reshape: NCHW -> (N, Cin, H*W).  No transpose, no cast, no pad.
    x3 = x.reshape(n, cin, hw)

    # ---- weights: ConvT [Cin, Cout, kh, kw] -> channel-major per-pixel matmuls.
    w1t = jnp.transpose(w1, (2, 3, 1, 0)).reshape(4 * cmid, cin).astype(compute_dtype)
    w2t = jnp.transpose(w2, (2, 3, 1, 0)).reshape(4 * cout, cmid).astype(compute_dtype)
    w2bd = _block_diag(w2t, 4)                                   # (16*Cout, 4*Cmid)
    b1c = jnp.tile(b1.astype(jnp.float32), 4).reshape(4 * cmid, 1)
    b2c = jnp.tile(b2.astype(jnp.float32), 16).reshape(16 * cout, 1)

    grid = (n, hw // ts)
    y = pl.pallas_call(
        _fused_decoder_kernel,
        out_shape=jax.ShapeDtypeStruct((n, n_out_rows, hw), compute_dtype),
        grid=grid,
        in_specs=[
            pl.BlockSpec((1, cin, ts), lambda i, s: (i, 0, s)),
            pl.BlockSpec((4 * cmid, cin), lambda i, s: (0, 0)),
            pl.BlockSpec((4 * cmid, 1), lambda i, s: (0, 0)),
            pl.BlockSpec((n_out_rows, 4 * cmid), lambda i, s: (0, 0)),
            pl.BlockSpec((n_out_rows, 1), lambda i, s: (0, 0)),
        ],
        out_specs=pl.BlockSpec((1, n_out_rows, ts), lambda i, s: (i, 0, s)),
        compiler_params=pltpu.CompilerParams(
            dimension_semantics=("parallel", "parallel"),
            vmem_limit_bytes=48 * 1024 * 1024,
        ),
    )(x3, w1t, b1c, w2bd, b2c)

    # ---- glue (once): pixel-shuffle both 2x upsamples straight into f32 NCHW.
    y = y.reshape(n, 2, 2, 2, 2, cout, h, w)           # (n, a1, b1, a2, b2, co, i, j)
    y = jnp.transpose(y, (0, 5, 6, 1, 3, 7, 2, 4))     # (n, co, i, a1, a2, j, b1, b2)
    y = y.reshape(n, cout, 4 * h, 4 * w).astype(jnp.float32)
    # NOTE: self.sigmoid is declared in __init__ but never used in forward().
    return y


# ----------------------------------------------------------------------------
# Pure-JAX references (no Pallas) for correctness checks
# ----------------------------------------------------------------------------
def _decoder_block_ref(x_nchw, weight, bias, bf16):
    if bf16:  # mimic the kernel's bf16 rounding of activations/weights
        x_nchw = x_nchw.astype(jnp.bfloat16)
        weight = weight.astype(jnp.bfloat16)
    nb, _, h, w = x_nchw.shape
    cout = weight.shape[1]
    y = jnp.einsum("ncij,coab->noiajb", x_nchw, weight,
                   preferred_element_type=jnp.float32)
    y = y.reshape(nb, cout, 2 * h, 2 * w) + bias.astype(jnp.float32)[None, :, None, None]
    return jnp.maximum(y, 0.0)


def _ae_ref(x, params, matched_bf16=False):
    y = _decoder_block_ref(x, params["d1_w"], params["d1_b"], matched_bf16)
    y = _decoder_block_ref(y, params["d2_w"], params["d2_b"], matched_bf16)
    if matched_bf16:  # kernel stores its result in bf16
        y = y.astype(jnp.bfloat16).astype(jnp.float32)
    return y


if __name__ == "__main__":
    in_channels = 4
    N, Cin, H, W = 2, 128, 16, 16   # d1 expects 128 input channels

    key = jax.random.PRNGKey(0)
    k_x, k_w1, k_b1, k_w2, k_b2 = jax.random.split(key, 5)

    x = jax.random.normal(k_x, (N, Cin, H, W), dtype=jnp.float32)

    params = {
        # ConvTranspose2d weight layout: [in_channels, out_channels, kH, kW]
        "d1_w": 0.05 * jax.random.normal(k_w1, (128, 64, 2, 2), dtype=jnp.float32),
        "d1_b": 0.05 * jax.random.normal(k_b1, (64,), dtype=jnp.float32),
        "d2_w": 0.05 * jax.random.normal(k_w2, (64, in_channels, 2, 2), dtype=jnp.float32),
        "d2_b": 0.05 * jax.random.normal(k_b2, (in_channels,), dtype=jnp.float32),
    }

    fwd = jax.jit(functools.partial(ae_container_forward, params=params))
    out = jax.block_until_ready(fwd(x))
    assert out.shape == (N, in_channels, 4 * H, 4 * W), out.shape

    # Strict check vs. a reference using the same bf16 rounding as the kernel.
    ref_bf16 = jax.block_until_ready(_ae_ref(x, params, matched_bf16=True))
    if not bool(jnp.allclose(out, ref_bf16, atol=2e-3, rtol=2e-3)):
        raise AssertionError("Pallas result does not match bf16-matched JAX reference")

    # Loose sanity check vs. the pure-f32 module semantics.
    ref_f32 = jax.block_until_ready(_ae_ref(x, params, matched_bf16=False))
    if not bool(jnp.allclose(out, ref_f32, atol=5e-2, rtol=5e-2)):
        raise AssertionError("Pallas result diverges from f32 JAX reference")

    print("KERNEL_OK")
</pallas_src>

<mosaic_0001>
module attributes {stable_mosaic.version = 11 : i64} {
  func.func @_fused_decoder_kernel(%arg0: i32, %arg1: i32, %arg2: memref<1x128x256xf32, #tpu.memory_space<vmem>>, %arg3: memref<256x128xbf16, #tpu.memory_space<vmem>>, %arg4: memref<256x1xf32, #tpu.memory_space<vmem>>, %arg5: memref<64x256xbf16, #tpu.memory_space<vmem>>, %arg6: memref<64x1xf32, #tpu.memory_space<vmem>>, %arg7: memref<1x64x256xbf16, #tpu.memory_space<vmem>>) attributes {dimension_semantics = [#tpu.dimension_semantics<parallel>, #tpu.dimension_semantics<parallel>], iteration_bounds = array<i64: 2, 1>, scalar_prefetch = 0 : i64, scratch_operands = 0 : i64, tpu.core_type = #tpu.core_type<tc>, window_params = [{transform_indices = @transform_0, window_bounds = array<i64: 1, 128, 256>}, {pipeline_mode = #tpu.pipeline_mode<synchronous>, transform_indices = @transform_1, window_bounds = array<i64: 256, 128>}, {pipeline_mode = #tpu.pipeline_mode<synchronous>, transform_indices = @transform_2, window_bounds = array<i64: 256, 1>}, {pipeline_mode = #tpu.pipeline_mode<synchronous>, transform_indices = @transform_3, window_bounds = array<i64: 64, 256>}, {pipeline_mode = #tpu.pipeline_mode<synchronous>, transform_indices = @transform_4, window_bounds = array<i64: 64, 1>}, {transform_indices = @transform_5, window_bounds = array<i64: 1, 64, 256>}]} {
    %c0 = arith.constant 0 : index
    %c0_0 = arith.constant 0 : index
    %c0_1 = arith.constant 0 : index
    %0 = vector.load %arg2[%c0, %c0_0, %c0_1] : memref<1x128x256xf32, #tpu.memory_space<vmem>>, vector<1x128x256xf32>
    %1 = vector.shape_cast %0 : vector<1x128x256xf32> to vector<128x256xf32>
    %2 = arith.truncf %1 : vector<128x256xf32> to vector<128x256xbf16>
    %c0_2 = arith.constant 0 : index
    %c0_3 = arith.constant 0 : index
    %3 = vector.load %arg3[%c0_2, %c0_3] : memref<256x128xbf16, #tpu.memory_space<vmem>>, vector<256x128xbf16>
    %cst = arith.constant dense<0.000000e+00> : vector<256x256xf32>
    %4 = tpu.matmul %3, %2, %cst {dimension_numbers = #tpu.dot_dimension_numbers<[1], [0], [0], [1], [0, 0, 1, 1], [], []>} : vector<256x128xbf16>, vector<128x256xbf16>, vector<256x256xf32> -> vector<256x256xf32>
    %c0_4 = arith.constant 0 : index
    %c0_5 = arith.constant 0 : index
    %5 = vector.load %arg4[%c0_4, %c0_5] : memref<256x1xf32, #tpu.memory_space<vmem>>, vector<256x1xf32>
    %6 = vector.broadcast %5 : vector<256x1xf32> to vector<256x256xf32>
    %7 = arith.addf %4, %6 : vector<256x256xf32>
    %cst_6 = arith.constant 0.000000e+00 : f32
    %8 = vector.broadcast %cst_6 : f32 to vector<256x256xf32>
    %9 = arith.maximumf %7, %8 : vector<256x256xf32>
    %c0_7 = arith.constant 0 : index
    %c0_8 = arith.constant 0 : index
    %10 = vector.load %arg5[%c0_7, %c0_8] : memref<64x256xbf16, #tpu.memory_space<vmem>>, vector<64x256xbf16>
    %11 = arith.truncf %9 : vector<256x256xf32> to vector<256x256xbf16>
    %cst_9 = arith.constant dense<0.000000e+00> : vector<64x256xf32>
    %12 = tpu.matmul %10, %11, %cst_9 {dimension_numbers = #tpu.dot_dimension_numbers<[1], [0], [0], [1], [0, 0, 1, 1], [], []>} : vector<64x256xbf16>, vector<256x256xbf16>, vector<64x256xf32> -> vector<64x256xf32>
    %c0_10 = arith.constant 0 : index
    %c0_11 = arith.constant 0 : index
    %13 = vector.load %arg6[%c0_10, %c0_11] : memref<64x1xf32, #tpu.memory_space<vmem>>, vector<64x1xf32>
    %14 = vector.broadcast %13 : vector<64x1xf32> to vector<64x256xf32>
    %15 = arith.addf %12, %14 : vector<64x256xf32>
    %cst_12 = arith.constant 0.000000e+00 : f32
    %16 = vector.broadcast %cst_12 : f32 to vector<64x256xf32>
    %17 = arith.maximumf %15, %16 : vector<64x256xf32>
    %18 = arith.truncf %17 : vector<64x256xf32> to vector<64x256xbf16>
    %c0_13 = arith.constant 0 : index
    %c0_14 = arith.constant 0 : index
    %c0_15 = arith.constant 0 : index
    %19 = vector.load %arg7[%c0_13, %c0_14, %c0_15] : memref<1x64x256xbf16, #tpu.memory_space<vmem>>, vector<1x64x256xbf16>
    %20 = vector.shape_cast %19 : vector<1x64x256xbf16> to vector<64x256xbf16>
    %21 = vector.shape_cast %18 : vector<64x256xbf16> to vector<1x64x256xbf16>
    tpu.vector_store %arg7[%c0_13, %c0_14, %c0_15], %21 {strides = array<i32>} : memref<1x64x256xbf16, #tpu.memory_space<vmem>>, vector<1x64x256xbf16>,
    return
  }
  func.func @transform_0(%arg0: i32, %arg1: i32) -> (i32, i32, i32) {
    %c0_i32 = arith.constant 0 : i32
    %c0_i32_0 = arith.constant 0 : i32
    return %arg0, %c0_i32, %arg1 : i32, i32, i32
  }
  func.func @transform_1(%arg0: i32, %arg1: i32) -> (i32, i32) {
    %c0_i32 = arith.constant 0 : i32
    %c0_i32_0 = arith.constant 0 : i32
    %c0_i32_1 = arith.constant 0 : i32
    return %c0_i32, %c0_i32_0 : i32, i32
  }
  func.func @transform_2(%arg0: i32, %arg1: i32) -> (i32, i32) {
    %c0_i32 = arith.constant 0 : i32
    %c0_i32_0 = arith.constant 0 : i32
    %c0_i32_1 = arith.constant 0 : i32
    return %c0_i32, %c0_i32_0 : i32, i32
  }
  func.func @transform_3(%arg0: i32, %arg1: i32) -> (i32, i32) {
    %c0_i32 = arith.constant 0 : i32
    %c0_i32_0 = arith.constant 0 : i32
    %c0_i32_1 = arith.constant 0 : i32
    return %c0_i32, %c0_i32_0 : i32, i32
  }
  func.func @transform_4(%arg0: i32, %arg1: i32) -> (i32, i32) {
    %c0_i32 = arith.constant 0 : i32
    %c0_i32_0 = arith.constant 0 : i32
    %c0_i32_1 = arith.constant 0 : i32
    return %c0_i32, %c0_i32_0 : i32, i32
  }
  func.func @transform_5(%arg0: i32, %arg1: i32) -> (i32, i32, i32) {
    %c0_i32 = arith.constant 0 : i32
    %c0_i32_0 = arith.constant 0 : i32
    return %arg0, %c0_i32, %arg1 : i32, i32, i32
  }
}

</mosaic_0001>

<bundles_post_ra>
// kernel: tile.1
= control target key start
LH: loop header
LB: loop body
LE: loop exit
PB: predicated region body
PF: predicated region fallthrough
CT: control target
= control target key end

     0   :  { %vm3_vm0 = vcmask 7168   ;;  %s64_s10 = smov 127   ;;  %s65_s15 = smov 125   ;;  %s114_s0 = inlined_call_operand.vmem [shape: f32[16,4], index: 0, kind: input, shape index: {}]   ;;  %s115_s1 = inlined_call_operand.vmem [shape: f32[64,1], index: 1, kind: output, shape index: {}]  }
   0x1   :  { %v23_v0 = vld [vmem:[%s114_s0] sm:$0xff]   ;;  %v49_v1 = vld [vmem:[%s114_s0 + $0x8] sm:$0xff]   ;;  %s63_s0 = smov 126  }
   0x2   :  { %24 = vrot.lane.b32.xlu1 %v23_v0, %s63_s0  ;;  %11 = vrot.lane.b32.xlu0 %v23_v0, %s64_s10  ;;  %4 = vst.msk [vmem:[%s115_s1] ss:$4 sm:$0xff] %vm3_vm0, %v23_v0   ;;  %50 = vst.msk [vmem:[%s115_s1 + $0x20] ss:$4 sm:$0xff] %vm3_vm0, %v49_v1  }
   0x6   :  { %31 = vrot.lane.b32.xlu1 %v49_v1, %s63_s0  ;;  %18 = vrot.lane.b32.xlu0 %v49_v1, %s64_s10 }
   0xa   :  { %44 = vrot.lane.b32.xlu1 %v49_v1, %s65_s15  ;;  %37 = vrot.lane.b32.xlu0 %v23_v0, %s65_s15 }
  0x74   :  { %v25_v2 = vpop.permute.xlu1 %24   ;;  %v12_v3 = vpop.permute.xlu0 %11  }
  0x75   :  { %54 = vst.msk [vmem:[%s115_s1 + $0x2] ss:$4 sm:$0xff] %vm3_vm0, %v25_v2   ;;  %51 = vst.msk [vmem:[%s115_s1 + $0x1] ss:$4 sm:$0xff] %vm3_vm0, %v12_v3  }
  0x78   :  { %v32_v4 = vpop.permute.xlu1 %31   ;;  %v19_v5 = vpop.permute.xlu0 %18  }
  0x79   :  { %56 = vst.msk [vmem:[%s115_s1 + $0x22] ss:$4 sm:$0xff] %vm3_vm0, %v32_v4   ;;  %53 = vst.msk [vmem:[%s115_s1 + $0x21] ss:$4 sm:$0xff] %vm3_vm0, %v19_v5  }
  0x7c   :  { %v45_v6 = vpop.permute.xlu1 %44   ;;  %v38_v7 = vpop.permute.xlu0 %37  }
  0x7d   :  { %59 = vst.msk [vmem:[%s115_s1 + $0x23] ss:$4 sm:$0xff] %vm3_vm0, %v45_v6   ;;  %57 = vst.msk [vmem:[%s115_s1 + $0x3] ss:$4 sm:$0xff] %vm3_vm0, %v38_v7  }

// kernel: tile.14
= control target key start
LH: loop header
LB: loop body
LE: loop exit
PB: predicated region body
PF: predicated region fallthrough
CT: control target
= control target key end

     0   :  { %2 = vsyncpa [#allocation1], 0  ;;  %s45_s6 = smov [#allocation0]   ;;  %s65_s0 = inlined_call_operand.hbm [shape: f32[4], index: 0, kind: input, shape index: {}]   ;;  %s66_s1 = inlined_call_operand.vmem [shape: f32[16,4], index: 1, kind: output, shape index: {}]  }
   0x1   :  { %s9_s7 = sshll.u32 %s45_s6, 4  ;;  %s10_s7 = int_to_ptr.vmem [resolvable:$true] %s9_s7 }
   0x2   :  { %s31_s8 = scalar_lea.vmem %s10_s7, 16  ;;  %s35_s9 = scalar_lea.vmem %s10_s7, 32 }
   0x3   :  { %p32_p0 = scmp.ne.s32.totalorder %s10_s7, %s31_s8  ;;  %p36_p1 = scmp.lt.s32.totalorder %s10_s7, %s10_s7 }
   0x4   :  { %p37_p2 = scmp.lt.s32.totalorder %s35_s9, %s31_s8 }
   0x6   :  { %p38_p3 = por %p37_p2, %p36_p1 }
   0x8   :  { %p39_p4 = pnand %p38_p3, %p32_p0 }
   0xa   :  { %42 = shalt.err (!%p39_p4)
}
   0xb   :  { %12 = dma.hbm_to_vmem [thread:$0]  %s65_s0, 16, %s10_s7, [#allocation1]  }
   0xc   :  { %43 = dma.done.wait [#allocation1], 16  }
   0xd   :  { %44 = vsyncadd [#allocation1], 4294967280  ;;  %v16_v0 = vld [vmem:[#allocation0] ss:$0 sm:$0xff] }
   0xe   :  { %17 = vst [vmem:[%s66_s1] sm:$0xff] %v16_v0  ;;  %21 = vst [vmem:[%s66_s1 + $0x8] sm:$0xff] %v16_v0 }
   0xf   :  { %20 = vsyncpa [#allocation1], 1 }

// kernel: tile.10
= control target key start
LH: loop header
LB: loop body
LE: loop exit
PB: predicated region body
PF: predicated region fallthrough
CT: control target
= control target key end

     0   :  { %2 = vsyncpa [#allocation1], 0  ;;  %s42_s6 = smov [#allocation0]   ;;  %s59_s0 = inlined_call_operand.hbm [shape: f32[64], index: 0, kind: input, shape index: {}]   ;;  %s60_s1 = inlined_call_operand.vmem [shape: f32[4,64], index: 1, kind: output, shape index: {}]  }
   0x1   :  { %s9_s7 = sshll.u32 %s42_s6, 4  ;;  %s10_s7 = int_to_ptr.vmem [resolvable:$true] %s9_s7 }
   0x2   :  { %s28_s8 = scalar_lea.vmem %s10_s7, 16  ;;  %s32_s9 = scalar_lea.vmem %s10_s7, 32 }
   0x3   :  { %p29_p0 = scmp.ne.s32.totalorder %s10_s7, %s28_s8  ;;  %p33_p1 = scmp.lt.s32.totalorder %s10_s7, %s10_s7 }
   0x4   :  { %p34_p2 = scmp.lt.s32.totalorder %s32_s9, %s28_s8 }
   0x6   :  { %p35_p3 = por %p34_p2, %p33_p1 }
   0x8   :  { %p36_p4 = pnand %p35_p3, %p29_p0 }
   0xa   :  { %39 = shalt.err (!%p36_p4)
}
   0xb   :  { %12 = dma.hbm_to_vmem [thread:$0]  %s59_s0, 16, %s10_s7, [#allocation1]  }
   0xc   :  { %40 = dma.done.wait [#allocation1], 16  }
   0xd   :  { %41 = vsyncadd [#allocation1], 4294967280  ;;  %v16_v0 = vld [vmem:[#allocation0] ss:$0 sm:$0xff] }
   0xe   :  { %17 = vst [vmem:[%s60_s1] sm:$0xf] %v16_v0 }
   0xf   :  { %18 = vsyncpa [#allocation1], 1 }

// kernel: tile.0
= control target key start
LH: loop header
LB: loop body
LE: loop exit
PB: predicated region body
PF: predicated region fallthrough
CT: control target
= control target key end

     0   :  { %s1091_s8 = smov 125   ;;  %s1092_s9 = smov 126   ;;  %vm8_vm0 = vcmask 7168   ;;  %s2190_s0 = inlined_call_operand.vmem [shape: f32[4,64], index: 0, kind: input, shape index: {}]   ;;  %s2191_s1 = inlined_call_operand.vmem [shape: f32[256,1], index: 1, kind: output, shape index: {}]  }
   0x1   :  { %v5_v0 = vld [vmem:[%s2190_s0] sm:$0xf]  ;;  %s1090_s0 = smov 127   ;;  %s1093_s10 = smov 124  }
   0x2   :  { %6 = vst [vmem:[#allocation0] sm:$0xf] %v5_v0  ;;  %s1094_s11 = smov 123   ;;  %s1095_s12 = smov 122  }
   0x3   :  { %s1096_s13 = smov 121   ;;  %s1097_s14 = smov 120  }
   0x4   :  { %s1098_s15 = smov 119   ;;  %s1099_s16 = smov 118  }
   0x5   :  { %s1100_s17 = smov 117   ;;  %s1101_s18 = smov 116  }
   0x6   :  { %s1102_s19 = smov 115   ;;  %s1103_s20 = smov 114  }
   0x7   :  { %s1104_s21 = smov 113   ;;  %s1105_s22 = smov 112  }
   0x8   :  { %s1106_s23 = smov 111   ;;  %s1107_s24 = smov 110  }
   0x9   :  { %v16_v1 = vld [vmem:[#allocation0] sm:$0xf]   ;;  %s1108_s25 = smov 109   ;;  %s1109_s26 = smov 108  }
   0xa   :  { %v40_v2 = vld [vmem:[#allocation0] sm:$0xf]   ;;  %17 = vrot.lane.b32.xlu0 %v16_v1, %s1090_s0  ;;  %s1110_s27 = smov 107   ;;  %s1111_s28 = smov 106  }
   0xb   :  { %41 = vrot.lane.b32.xlu1 %v40_v2, %s1091_s8  ;;  %v28_v3 = vld [vmem:[#allocation0] sm:$0xf]   ;;  %s1112_s29 = smov 105   ;;  %s1113_s30 = smov 104  }
   0xc   :  { %v52_v4 = vld [vmem:[#allocation0] sm:$0xf]   ;;  %s1114_s2 = smov 103   ;;  %s1115_s3 = smov 102  }
   0xd   :  { %v64_v5 = vld [vmem:[#allocation0] sm:$0xf]   ;;  %s1116_s4 = smov 101   ;;  %s1117_s5 = smov 100  }
   0xe   :  { %29 = vrot.lane.b32.xlu0 %v28_v3, %s1092_s9  ;;  %v76_v6 = vld [vmem:[#allocation0] sm:$0xf]   ;;  %s1118_s6 = smov 99   ;;  %s1119_s7 = smov 98  }
   0xf   :  { %53 = vrot.lane.b32.xlu1 %v52_v4, %s1093_s10  ;;  %v88_v7 = vld [vmem:[#allocation0] sm:$0xf]   ;;  %s1120_s0 = smov 97   ;;  %s1121_s8 = smov 96  }
  0x10   :  { %v100_v8 = vld [vmem:[#allocation0] sm:$0xf]   ;;  %s1122_s9 = smov 95   ;;  %s1123_s10 = smov 94  }
  0x11   :  { %v112_v9 = vld [vmem:[#allocation0] sm:$0xf]  }
  0x12   :  { %65 = vrot.lane.b32.xlu0 %v64_v5, %s1094_s11  ;;  %v124_v10 = vld [vmem:[#allocation0] sm:$0xf]   ;;  %s1124_s11 = smov 93  }
  0x13   :  { %77 = vrot.lane.b32.xlu1 %v76_v6, %s1095_s12  ;;  %v136_v11 = vld [vmem:[#allocation0] sm:$0xf]   ;;  %s1125_s12 = smov 92  }
  0x14   :  { %v148_v12 = vld [vmem:[#allocation0] sm:$0xf]  }
  0x15   :  { %v160_v13 = vld [vmem:[#allocation0] sm:$0xf]  }
  0x16   :  { %89 = vrot.lane.b32.xlu0 %v88_v7, %s1096_s13  ;;  %v172_v14 = vld [vmem:[#allocation0] sm:$0xf]   ;;  %s1126_s13 = smov 91  }
  0x17   :  { %101 = vrot.lane.b32.xlu1 %v100_v8, %s1097_s14  ;;  %v184_v15 = vld [vmem:[#allocation0] sm:$0xf]   ;;  %s1127_s14 = smov 90  }
  0x18   :  { %v196_v16 = vld [vmem:[#allocation0] sm:$0xf]  }
  0x19   :  { %v208_v17 = vld [vmem:[#allocation0] sm:$0xf]  }
  0x1a   :  { %113 = vrot.lane.b32.xlu0 %v112_v9, %s1098_s15  ;;  %v220_v18 = vld [vmem:[#allocation0] sm:$0xf]   ;;  %s1128_s15 = smov 89  }
  0x1b   :  { %125 = vrot.lane.b32.xlu1 %v124_v10, %s1099_s16  ;;  %v232_v19 = vld [vmem:[#allocation0] sm:$0xf]   ;;  %s1129_s16 = smov 88  }
  0x1c   :  { %v244_v20 = vld [vmem:[#allocation0] sm:$0xf]  }
  0x1d   :  { %v256_v21 = vld [vmem:[#allocation0] sm:$0xf]  }
  0x1e   :  { %137 = vrot.lane.b32.xlu0 %v136_v11, %s1100_s17  ;;  %v268_v22 = vld [vmem:[#allocation0] sm:$0xf]   ;;  %s1130_s17 = smov 87  }
  0x1f   :  { %149 = vrot.lane.b32.xlu1 %v148_v12, %s1101_s18  ;;  %v280_v23 = vld [vmem:[#allocation0] sm:$0xf]   ;;  %s1131_s18 = smov 86  }
  0x20   :  { %v292_v24 = vld [vmem:[#allocation0] sm:$0xf]  }
  0x21   :  { %v304_v25 = vld [vmem:[#allocation0] sm:$0xf]  }
  0x22   :  { %161 = vrot.lane.b32.xlu0 %v160_v13, %s1102_s19  ;;  %v316_v26 = vld [vmem:[#allocation0] sm:$0xf]   ;;  %s1132_s19 = smov 85  }
  0x23   :  { %173 = vrot.lane.b32.xlu1 %v172_v14, %s1103_s20  ;;  %v328_v27 = vld [vmem:[#allocation0] sm:$0xf]   ;;  %s1133_s20 = smov 84  }
  0x24   :  { %v340_v28 = vld [vmem:[#allocation0] sm:$0xf]  }
  0x25   :  { %v352_v29 = vld [vmem:[#allocation0] sm:$0xf]  }
  0x26   :  { %185 = vrot.lane.b32.xlu0 %v184_v15, %s1104_s21  ;;  %v364_v30 = vld [vmem:[#allocation0] sm:$0xf]   ;;  %s1134_s21 = smov 83  }
  0x27   :  { %197 = vrot.lane.b32.xlu1 %v196_v16, %s1105_s22  ;;  %v376_v31 = vld [vmem:[#allocation0] sm:$0xf]   ;;  %s1135_s22 = smov 82  }
  0x28   :  { %v388_v32 = vld [vmem:[#allocation0] sm:$0xf]  }
  0x29   :  { %v400_v33 = vld [vmem:[#allocation0] sm:$0xf]  }
  0x2a   :  { %209 = vrot.lane.b32.xlu0 %v208_v17, %s1106_s23  ;;  %v412_v34 = vld [vmem:[#allocation0] sm:$0xf]   ;;  %s1136_s23 = smov 81  }
  0x2b   :  { %221 = vrot.lane.b32.xlu1 %v220_v18, %s1107_s24  ;;  %v424_v35 = vld [vmem:[#allocation0] sm:$0xf]   ;;  %s1137_s24 = smov 80  }
  0x2c   :  { %v436_v36 = vld [vmem:[#allocation0] sm:$0xf]  }
  0x2d   :  { %v448_v37 = vld [vmem:[#allocation0] sm:$0xf]  }
  0x2e   :  { %233 = vrot.lane.b32.xlu0 %v232_v19, %s1108_s25  ;;  %v460_v38 = vld [vmem:[#allocation0] sm:$0xf]   ;;  %s1138_s25 = smov 79  }
  0x2f   :  { %245 = vrot.lane.b32.xlu1 %v244_v20, %s1109_s26  ;;  %v472_v39 = vld [vmem:[#allocation0] sm:$0xf]   ;;  %s1139_s26 = smov 78  }
  0x30   :  { %v484_v40 = vld [vmem:[#allocation0] sm:$0xf]  }
  0x31   :  { %v496_v41 = vld [vmem:[#allocation0] sm:$0xf]  }
  0x32   :  { %257 = vrot.lane.b32.xlu0 %v256_v21, %s1110_s27  ;;  %v508_v42 = vld [vmem:[#allocation0] sm:$0xf]   ;;  %s1140_s27 = smov 77  }
  0x33   :  { %269 = vrot.lane.b32.xlu1 %v268_v22, %s1111_s28  ;;  %v520_v43 = vld [vmem:[#allocation0] sm:$0xf]   ;;  %s1141_s28 = smov 76  }
  0x34   :  { %v532_v44 = vld [vmem:[#allocation0] sm:$0xf]  }
  0x35   :  { %v544_v45 = vld [vmem:[#allocation0] sm:$0xf]  }
  0x36   :  { %281 = vrot.lane.b32.xlu0 %v280_v23, %s1112_s29  ;;  %v556_v46 = vld [vmem:[#allocation0] sm:$0xf]   ;;  %s1142_s29 = smov 75  }
  0x37   :  { %293 = vrot.lane.b32.xlu1 %v292_v24, %s1113_s30  ;;  %v568_v47 = vld [vmem:[#allocation0] sm:$0xf]   ;;  %s1143_s30 = smov 74  }
  0x38   :  { %v580_v48 = vld [vmem:[#allocation0] sm:$0xf]  }
  0x39   :  { %v592_v49 = vld [vmem:[#allocation0] sm:$0xf]  }
  0x3a   :  { %305 = vrot.lane.b32.xlu0 %v304_v25, %s1114_s2  ;;  %v604_v50 = vld [vmem:[#allocation0] sm:$0xf]   ;;  %s1144_s2 = smov 73  }
  0x3b   :  { %317 = vrot.lane.b32.xlu1 %v316_v26, %s1115_s3  ;;  %v616_v51 = vld [vmem:[#allocation0] sm:$0xf]   ;;  %s1145_s3 = smov 72  }
  0x3c   :  { %v628_v52 = vld [vmem:[#allocation0] sm:$0xf]  }
  0x3d   :  { %v640_v53 = vld [vmem:[#allocation0] sm:$0xf]  }
  0x3e   :  { %329 = vrot.lane.b32.xlu0 %v328_v27, %s1116_s4  ;;  %v652_v54 = vld [vmem:[#allocation0] sm:$0xf]  }
  0x3f   :  { %341 = vrot.lane.b32.xlu1 %v340_v28, %s1117_s5  ;;  %v664_v55 = vld [vmem:[#allocation0] sm:$0xf]  }
  0x40   :  { %v676_v56 = vld [vmem:[#allocation0] sm:$0xf]  }
  0x41   :  { %v688_v57 = vld [vmem:[#allocation0] sm:$0xf]  }
  0x42   :  { %353 = vrot.lane.b32.xlu0 %v352_v29, %s1118_s6  ;;  %v700_v58 = vld [vmem:[#allocation0] sm:$0xf]   ;;  %s1152_s6 = smov 65  }
  0x43   :  { %365 = vrot.lane.b32.xlu1 %v364_v30, %s1119_s7  ;;  %v7_v59 = vld [vmem:[#allocation0] sm:$0xf]  }
  0x44   :  { %9 = vst.msk [vmem:[%s2191_s1] sm:$0x1] %vm8_vm0, %v7_v59   ;;  %772 = vst.msk [vmem:[%s2191_s1 + $0x3f] sm:$0x2] %vm8_vm0, %v7_v59   ;;  %v712_v60 = vld [vmem:[#allocation0] sm:$0xf]  }
  0x45   :  { %773 = vst.msk [vmem:[%s2191_s1 + $0x7e] sm:$0x4] %vm8_vm0, %v7_v59   ;;  %774 = vst.msk [vmem:[%s2191_s1 + $0xbd] sm:$0x8] %vm8_vm0, %v7_v59   ;;  %v724_v61 = vld [vmem:[#allocation0] sm:$0xf]  }
  0x46   :  { %377 = vrot.lane.b32.xlu0 %v376_v31, %s1120_s0  ;;  %v736_v0 = vld [vmem:[#allocation0] sm:$0xf]  }
  0x47   :  { %389 = vrot.lane.b32.xlu1 %v388_v32, %s1121_s8  ;;  %v748_v1 = vld [vmem:[#allocation0] sm:$0xf]  }
  0x48   :  { %v760_v4 = vld [vmem:[#allocation0] sm:$0xf]  }
  0x4a   :  { %401 = vrot.lane.b32.xlu0 %v400_v33, %s1122_s9 }
  0x4b   :  { %413 = vrot.lane.b32.xlu1 %v412_v34, %s1123_s10 }
  0x4e   :  { %425 = vrot.lane.b32.xlu0 %v424_v35, %s1124_s11  ;;  %s1146_s11 = smov 71  }
  0x4f   :  { %437 = vrot.lane.b32.xlu1 %v436_v36, %s1125_s12  ;;  %s1147_s12 = smov 70  }
  0x52   :  { %449 = vrot.lane.b32.xlu0 %v448_v37, %s1126_s13 }
  0x53   :  { %461 = vrot.lane.b32.xlu1 %v460_v38, %s1127_s14 }
  0x56   :  { %473 = vrot.lane.b32.xlu0 %v472_v39, %s1128_s15 }
  0x57   :  { %485 = vrot.lane.b32.xlu1 %v484_v40, %s1129_s16 }
  0x5a   :  { %497 = vrot.lane.b32.xlu0 %v496_v41, %s1130_s17  ;;  %s1150_s17 = smov 67  }
  0x5b   :  { %509 = vrot.lane.b32.xlu1 %v508_v42, %s1131_s18  ;;  %s1151_s18 = smov 66  }
  0x5e   :  { %521 = vrot.lane.b32.xlu0 %v520_v43, %s1132_s19 }
  0x5f   :  { %533 = vrot.lane.b32.xlu1 %v532_v44, %s1133_s20 }
  0x62   :  { %545 = vrot.lane.b32.xlu0 %v544_v45, %s1134_s21 }
  0x63   :  { %557 = vrot.lane.b32.xlu1 %v556_v46, %s1135_s22 }
  0x66   :  { %569 = vrot.lane.b32.xlu0 %v568_v47, %s1136_s23 }
  0x67   :  { %581 = vrot.lane.b32.xlu1 %v580_v48, %s1137_s24 }
  0x6a   :  { %593 = vrot.lane.b32.xlu0 %v592_v49, %s1138_s25 }
  0x6b   :  { %605 = vrot.lane.b32.xlu1 %v604_v50, %s1139_s26 }
  0x6e   :  { %617 = vrot.lane.b32.xlu0 %v616_v51, %s1140_s27 }
  0x6f   :  { %629 = vrot.lane.b32.xlu1 %v628_v52, %s1141_s28 }
  0x72   :  { %641 = vrot.lane.b32.xlu0 %v640_v53, %s1142_s29  ;;  %s1148_s29 = smov 69  }
  0x73   :  { %653 = vrot.lane.b32.xlu1 %v652_v54, %s1143_s30  ;;  %s1149_s30 = smov 68  }
  0x76   :  { %665 = vrot.lane.b32.xlu0 %v664_v55, %s1144_s2 }
  0x77   :  { %677 = vrot.lane.b32.xlu1 %v676_v56, %s1145_s3 }
  0x7a   :  { %689 = vrot.lane.b32.xlu0 %v688_v57, %s1146_s11 }
  0x7b   :  { %701 = vrot.lane.b32.xlu1 %v700_v58, %s1147_s12 }
  0x7c   :  { %v18_v62 = vpop.permute.xlu0 %17  }
  0x7d   :  { %v42_v63 = vpop.permute.xlu1 %41   ;;  %775 = vst.msk [vmem:[%s2191_s1 + $0x1] sm:$0x1] %vm8_vm0, %v18_v62   ;;  %776 = vst.msk [vmem:[%s2191_s1 + $0x40] sm:$0x2] %vm8_vm0, %v18_v62  }
  0x7e   :  { %777 = vst.msk [vmem:[%s2191_s1 + $0x7f] sm:$0x4] %vm8_vm0, %v18_v62   ;;  %778 = vst.msk [vmem:[%s2191_s1 + $0xbe] sm:$0x8] %vm8_vm0, %v18_v62   ;;  %713 = vrot.lane.b32.xlu0 %v712_v60, %s1148_s29 }
  0x7f   :  { %783 = vst.msk [vmem:[%s2191_s1 + $0x3] sm:$0x1] %vm8_vm0, %v42_v63   ;;  %784 = vst.msk [vmem:[%s2191_s1 + $0x42] sm:$0x2] %vm8_vm0, %v42_v63   ;;  %725 = vrot.lane.b32.xlu1 %v724_v61, %s1149_s30 }
  0x80   :  { %785 = vst.msk [vmem:[%s2191_s1 + $0x81] sm:$0x4] %vm8_vm0, %v42_v63   ;;  %786 = vst.msk [vmem:[%s2191_s1 + $0xc0] sm:$0x8] %vm8_vm0, %v42_v63   ;;  %v30_v2 = vpop.permute.xlu0 %29  }
  0x81   :  { %v54_v3 = vpop.permute.xlu1 %53   ;;  %779 = vst.msk [vmem:[%s2191_s1 + $0x2] sm:$0x1] %vm8_vm0, %v30_v2   ;;  %780 = vst.msk [vmem:[%s2191_s1 + $0x41] sm:$0x2] %vm8_vm0, %v30_v2  }
  0x82   :  { %781 = vst.msk [vmem:[%s2191_s1 + $0x80] sm:$0x4] %vm8_vm0, %v30_v2   ;;  %782 = vst.msk [vmem:[%s2191_s1 + $0xbf] sm:$0x8] %vm8_vm0, %v30_v2   ;;  %737 = vrot.lane.b32.xlu0 %v736_v0, %s1150_s17 }
  0x83   :  { %787 = vst.msk [vmem:[%s2191_s1 + $0x4] sm:$0x1] %vm8_vm0, %v54_v3   ;;  %788 = vst.msk [vmem:[%s2191_s1 + $0x43] sm:$0x2] %vm8_vm0, %v54_v3   ;;  %749 = vrot.lane.b32.xlu1 %v748_v1, %s1151_s18 }
  0x84   :  { %789 = vst.msk [vmem:[%s2191_s1 + $0x82] sm:$0x4] %vm8_vm0, %v54_v3   ;;  %790 = vst.msk [vmem:[%s2191_s1 + $0xc1] sm:$0x8] %vm8_vm0, %v54_v3   ;;  %v66_v5 = vpop.permute.xlu0 %65  }
  0x85   :  { %v78_v6 = vpop.permute.xlu1 %77   ;;  %791 = vst.msk [vmem:[%s2191_s1 + $0x5] sm:$0x1] %vm8_vm0, %v66_v5   ;;  %792 = vst.msk [vmem:[%s2191_s1 + $0x44] sm:$0x2] %vm8_vm0, %v66_v5  }
  0x86   :  { %793 = vst.msk [vmem:[%s2191_s1 + $0x83] sm:$0x4] %vm8_vm0, %v66_v5   ;;  %794 = vst.msk [vmem:[%s2191_s1 + $0xc2] sm:$0x8] %vm8_vm0, %v66_v5   ;;  %761 = vrot.lane.b32.xlu0 %v760_v4, %s1152_s6 }
  0x87   :  { %795 = vst.msk [vmem:[%s2191_s1 + $0x6] sm:$0x1] %vm8_vm0, %v78_v6   ;;  %796 = vst.msk [vmem:[%s2191_s1 + $0x45] sm:$0x2] %vm8_vm0, %v78_v6  }
  0x88   :  { %797 = vst.msk [vmem:[%s2191_s1 + $0x84] sm:$0x4] %vm8_vm0, %v78_v6   ;;  %798 = vst.msk [vmem:[%s2191_s1 + $0xc3] sm:$0x8] %vm8_vm0, %v78_v6   ;;  %v90_v7 = vpop.permute.xlu0 %89  }
  0x89   :  { %v102_v8 = vpop.permute.xlu1 %101   ;;  %799 = vst.msk [vmem:[%s2191_s1 + $0x7] sm:$0x1] %vm8_vm0, %v90_v7   ;;  %800 = vst.msk [vmem:[%s2191_s1 + $0x46] sm:$0x2] %vm8_vm0, %v90_v7  }
  0x8a   :  { %801 = vst.msk [vmem:[%s2191_s1 + $0x85] sm:$0x4] %vm8_vm0, %v90_v7   ;;  %802 = vst.msk [vmem:[%s2191_s1 + $0xc4] sm:$0x8] %vm8_vm0, %v90_v7  }
  0x8b   :  { %803 = vst.msk [vmem:[%s2191_s1 + $0x8] sm:$0x1] %vm8_vm0, %v102_v8   ;;  %804 = vst.msk [vmem:[%s2191_s1 + $0x47] sm:$0x2] %vm8_vm0, %v102_v8  }
  0x8c   :  { %805 = vst.msk [vmem:[%s2191_s1 + $0x86] sm:$0x4] %vm8_vm0, %v102_v8   ;;  %806 = vst.msk [vmem:[%s2191_s1 + $0xc5] sm:$0x8] %vm8_vm0, %v102_v8   ;;  %v114_v9 = vpop.permute.xlu0 %113  }
  0x8d   :  { %v126_v10 = vpop.permute.xlu1 %125   ;;  %807 = vst.msk [vmem:[%s2191_s1 + $0x9] sm:$0x1] %vm8_vm0, %v114_v9   ;;  %808 = vst.msk [vmem:[%s2191_s1 + $0x48] sm:$0x2] %vm8_vm0, %v114_v9  }
  0x8e   :  { %809 = vst.msk [vmem:[%s2191_s1 + $0x87] sm:$0x4] %vm8_vm0, %v114_v9   ;;  %810 = vst.msk [vmem:[%s2191_s1 + $0xc6] sm:$0x8] %vm8_vm0, %v114_v9  }
  0x8f   :  { %811 = vst.msk [vmem:[%s2191_s1 + $0xa] sm:$0x1] %vm8_vm0, %v126_v10   ;;  %812 = vst.msk [vmem:[%s2191_s1 + $0x49] sm:$0x2] %vm8_vm0, %v126_v10  }
  0x90   :  { %813 = vst.msk [vmem:[%s2191_s1 + $0x88] sm:$0x4] %vm8_vm0, %v126_v10   ;;  %814 = vst.msk [vmem:[%s2191_s1 + $0xc7] sm:$0x8] %vm8_vm0, %v126_v10   ;;  %v138_v11 = vpop.permute.xlu0 %137  }
  0x91   :  { %v150_v12 = vpop.permute.xlu1 %149   ;;  %815 = vst.msk [vmem:[%s2191_s1 + $0xb] sm:$0x1] %vm8_vm0, %v138_v11   ;;  %816 = vst.msk [vmem:[%s2191_s1 + $0x4a] sm:$0x2] %vm8_vm0, %v138_v11  }
  0x92   :  { %817 = vst.msk [vmem:[%s2191_s1 + $0x89] sm:$0x4] %vm8_vm0, %v138_v11   ;;  %818 = vst.msk [vmem:[%s2191_s1 + $0xc8] sm:$0x8] %vm8_vm0, %v138_v11  }
  0x93   :  { %819 = vst.msk [vmem:[%s2191_s1 + $0xc] sm:$0x1] %vm8_vm0, %v150_v12   ;;  %820 = vst.msk [vmem:[%s2191_s1 + $0x4b] sm:$0x2] %vm8_vm0, %v150_v12  }
  0x94   :  { %821 = vst.msk [vmem:[%s2191_s1 + $0x8a] sm:$0x4] %vm8_vm0, %v150_v12   ;;  %822 = vst.msk [vmem:[%s2191_s1 + $0xc9] sm:$0x8] %vm8_vm0, %v150_v12   ;;  %v162_v13 = vpop.permute.xlu0 %161  }
  0x95   :  { %v174_v14 = vpop.permute.xlu1 %173   ;;  %823 = vst.msk [vmem:[%s2191_s1 + $0xd] sm:$0x1] %vm8_vm0, %v162_v13   ;;  %824 = vst.msk [vmem:[%s2191_s1 + $0x4c] sm:$0x2] %vm8_vm0, %v162_v13  }
  0x96   :  { %825 = vst.msk [vmem:[%s2191_s1 + $0x8b] sm:$0x4] %vm8_vm0, %v162_v13   ;;  %826 = vst.msk [vmem:[%s2191_s1 + $0xca] sm:$0x8] %vm8_vm0, %v162_v13  }
  0x97   :  { %827 = vst.msk [vmem:[%s2191_s1 + $0xe] sm:$0x1] %vm8_vm0, %v174_v14   ;;  %828 = vst.msk [vmem:[%s2191_s1 + $0x4d] sm:$0x2] %vm8_vm0, %v174_v14  }
  0x98   :  { %829 = vst.msk [vmem:[%s2191_s1 + $0x8c] sm:$0x4] %vm8_vm0, %v174_v14   ;;  %830 = vst.msk [vmem:[%s2191_s1 + $0xcb] sm:$0x8] %vm8_vm0, %v174_v14   ;;  %v186_v15 = vpop.permute.xlu0 %185  }
  0x99   :  { %v198_v16 = vpop.permute.xlu1 %197   ;;  %831 = vst.msk [vmem:[%s2191_s1 + $0xf] sm:$0x1] %vm8_vm0, %v186_v15   ;;  %832 = vst.msk [vmem:[%s2191_s1 + $0x4e] sm:$0x2] %vm8_vm0, %v186_v15  }
  0x9a   :  { %833 = vst.msk [vmem:[%s2191_s1 + $0x8d] sm:$0x4] %vm8_vm0, %v186_v15   ;;  %834 = vst.msk [vmem:[%s2191_s1 + $0xcc] sm:$0x8] %vm8_vm0, %v186_v15  }
  0x9b   :  { %835 = vst.msk [vmem:[%s2191_s1 + $0x10] sm:$0x1] %vm8_vm0, %v198_v16   ;;  %836 = vst.msk [vmem:[%s2191_s1 + $0x4f] sm:$0x2] %vm8_vm0, %v198_v16  }
  0x9c   :  { %837 = vst.msk [vmem:[%s2191_s1 + $0x8e] sm:$0x4] %vm8_vm0, %v198_v16   ;;  %838 = vst.msk [vmem:[%s2191_s1 + $0xcd] sm:$0x8] %vm8_vm0, %v198_v16   ;;  %v210_v17 = vpop.permute.xlu0 %209  }
  0x9d   :  { %v222_v18 = vpop.permute.xlu1 %221   ;;  %839 = vst.msk [vmem:[%s2191_s1 + $0x11] sm:$0x1] %vm8_vm0, %v210_v17   ;;  %840 = vst.msk [vmem:[%s2191_s1 + $0x50] sm:$0x2] %vm8_vm0, %v210_v17  }
  0x9e   :  { %841 = vst.msk [vmem:[%s2191_s1 + $0x8f] sm:$0x4] %vm8_vm0, %v210_v17   ;;  %842 = vst.msk [vmem:[%s2191_s1 + $0xce] sm:$0x8] %vm8_vm0, %v210_v17  }
  0x9f   :  { %843 = vst.msk [vmem:[%s2191_s1 + $0x12] sm:$0x1] %vm8_vm0, %v222_v18   ;;  %844 = vst.msk [vmem:[%s2191_s1 + $0x51] sm:$0x2] %vm8_vm0, %v222_v18  }
  0xa0   :  { %845 = vst.msk [vmem:[%s2191_s1 + $0x90] sm:$0x4] %vm8_vm0, %v222_v18   ;;  %846 = vst.msk [vmem:[%s2191_s1 + $0xcf] sm:$0x8] %vm8_vm0, %v222_v18   ;;  %v234_v19 = vpop.permute.xlu0 %233  }
  0xa1   :  { %v246_v20 = vpop.permute.xlu1 %245   ;;  %847 = vst.msk [vmem:[%s2191_s1 + $0x13] sm:$0x1] %vm8_vm0, %v234_v19   ;;  %848 = vst.msk [vmem:[%s2191_s1 + $0x52] sm:$0x2] %vm8_vm0, %v234_v19  }
  0xa2   :  { %849 = vst.msk [vmem:[%s2191_s1 + $0x91] sm:$0x4] %vm8_vm0, %v234_v19   ;;  %850 = vst.msk [vmem:[%s2191_s1 + $0xd0] sm:$0x8] %vm8_vm0, %v234_v19  }
  0xa3   :  { %851 = vst.msk [vmem:[%s2191_s1 + $0x14] sm:$0x1] %vm8_vm0, %v246_v20   ;;  %852 = vst.msk [vmem:[%s2191_s1 + $0x53] sm:$0x2] %vm8_vm0, %v246_v20  }
  0xa4   :  { %853 = vst.msk [vmem:[%s2191_s1 + $0x92] sm:$0x4] %vm8_vm0, %v246_v20   ;;  %854 = vst.msk [vmem:[%s2191_s1 + $0xd1] sm:$0x8] %vm8_vm0, %v246_v20   ;;  %v258_v21 = vpop.permute.xlu0 %257  }
  0xa5   :  { %v270_v22 = vpop.permute.xlu1 %269   ;;  %855 = vst.msk [vmem:[%s2191_s1 + $0x15] sm:$0x1] %vm8_vm0, %v258_v21   ;;  %856 = vst.msk [vmem:[%s2191_s1 + $0x54] sm:$0x2] %vm8_vm0, %v258_v21  }
  0xa6   :  { %857 = vst.msk [vmem:[%s2191_s1 + $0x93] sm:$0x4] %vm8_vm0, %v258_v21   ;;  %858 = vst.msk [vmem:[%s2191_s1 + $0xd2] sm:$0x8] %vm8_vm0, %v258_v21  }
  0xa7   :  { %859 = vst.msk [vmem:[%s2191_s1 + $0x16] sm:$0x1] %vm8_vm0, %v270_v22   ;;  %860 = vst.msk [vmem:[%s2191_s1 + $0x55] sm:$0x2] %vm8_vm0, %v270_v22  }
  0xa8   :  { %861 = vst.msk [vmem:[%s2191_s1 + $0x94] sm:$0x4] %vm8_vm0, %v270_v22   ;;  %862 = vst.msk [vmem:[%s2191_s1 + $0xd3] sm:$0x8] %vm8_vm0, %v270_v22   ;;  %v282_v23 = vpop.permute.xlu0 %281  }
  0xa9   :  { %v294_v24 = vpop.permute.xlu1 %293   ;;  %863 = vst.msk [vmem:[%s2191_s1 + $0x17] sm:$0x1] %vm8_vm0, %v282_v23   ;;  %864 = vst.msk [vmem:[%s2191_s1 + $0x56] sm:$0x2] %vm8_vm0, %v282_v23  }
  0xaa   :  { %865 = vst.msk [vmem:[%s2191_s1 + $0x95] sm:$0x4] %vm8_vm0, %v282_v23   ;;  %866 = vst.msk [vmem:[%s2191_s1 + $0xd4] sm:$0x8] %vm8_vm0, %v282_v23  }
  0xab   :  { %867 = vst.msk [vmem:[%s2191_s1 + $0x18] sm:$0x1] %vm8_vm0, %v294_v24   ;;  %868 = vst.msk [vmem:[%s2191_s1 + $0x57] sm:$0x2] %vm8_vm0, %v294_v24  }
  0xac   :  { %869 = vst.msk [vmem:[%s2191_s1 + $0x96] sm:$0x4] %vm8_vm0, %v294_v24   ;;  %870 = vst.msk [vmem:[%s2191_s1 + $0xd5] sm:$0x8] %vm8_vm0, %v294_v24   ;;  %v306_v25 = vpop.permute.xlu0 %305  }
  0xad   :  { %v318_v26 = vpop.permute.xlu1 %317   ;;  %871 = vst.msk [vmem:[%s2191_s1 + $0x19] sm:$0x1] %vm8_vm0, %v306_v25   ;;  %872 = vst.msk [vmem:[%s2191_s1 + $0x58] sm:$0x2] %vm8_vm0, %v306_v25  }
  0xae   :  { %873 = vst.msk [vmem:[%s2191_s1 + $0x97] sm:$0x4] %vm8_vm0, %v306_v25   ;;  %874 = vst.msk [vmem:[%s2191_s1 + $0xd6] sm:$0x8] %vm8_vm0, %v306_v25  }
  0xaf   :  { %875 = vst.msk [vmem:[%s2191_s1 + $0x1a] sm:$0x1] %vm8_vm0, %v318_v26   ;;  %876 = vst.msk [vmem:[%s2191_s1 + $0x59] sm:$0x2] %vm8_vm0, %v318_v26  }
  0xb0   :  { %877 = vst.msk [vmem:[%s2191_s1 + $0x98] sm:$0x4] %vm8_vm0, %v318_v26   ;;  %878 = vst.msk [vmem:[%s2191_s1 + $0xd7] sm:$0x8] %vm8_vm0, %v318_v26   ;;  %v330_v27 = vpop.permute.xlu0 %329  }
  0xb1   :  { %v342_v28 = vpop.permute.xlu1 %341   ;;  %879 = vst.msk [vmem:[%s2191_s1 + $0x1b] sm:$0x1] %vm8_vm0, %v330_v27   ;;  %880 = vst.msk [vmem:[%s2191_s1 + $0x5a] sm:$0x2] %vm8_vm0, %v330_v27  }
  0xb2   :  { %881 = vst.msk [vmem:[%s2191_s1 + $0x99] sm:$0x4] %vm8_vm0, %v330_v27   ;;  %882 = vst.msk [vmem:[%s2191_s1 + $0xd8] sm:$0x8] %vm8_vm0, %v330_v27  }
  0xb3   :  { %883 = vst.msk [vmem:[%s2191_s1 + $0x1c] sm:$0x1] %vm8_vm0, %v342_v28   ;;  %884 = vst.msk [vmem:[%s2191_s1 + $0x5b] sm:$0x2] %vm8_vm0, %v342_v28  }
  0xb4   :  { %885 = vst.msk [vmem:[%s2191_s1 + $0x9a] sm:$0x4] %vm8_vm0, %v342_v28   ;;  %886 = vst.msk [vmem:[%s2191_s1 + $0xd9] sm:$0x8] %vm8_vm0, %v342_v28   ;;  %v354_v29 = vpop.permute.xlu0 %353  }
  0xb5   :  { %v366_v30 = vpop.permute.xlu1 %365   ;;  %887 = vst.msk [vmem:[%s2191_s1 + $0x1d] sm:$0x1] %vm8_vm0, %v354_v29   ;;  %888 = vst.msk [vmem:[%s2191_s1 + $0x5c] sm:$0x2] %vm8_vm0, %v354_v29  }
  0xb6   :  { %889 = vst.msk [vmem:[%s2191_s1 + $0x9b] sm:$0x4] %vm8_vm0, %v354_v29   ;;  %890 = vst.msk [vmem:[%s2191_s1 + $0xda] sm:$0x8] %vm8_vm0, %v354_v29  }
  0xb7   :  { %891 = vst.msk [vmem:[%s2191_s1 + $0x1e] sm:$0x1] %vm8_vm0, %v366_v30   ;;  %892 = vst.msk [vmem:[%s2191_s1 + $0x5d] sm:$0x2] %vm8_vm0, %v366_v30  }
  0xb8   :  { %893 = vst.msk [vmem:[%s2191_s1 + $0x9c] sm:$0x4] %vm8_vm0, %v366_v30   ;;  %894 = vst.msk [vmem:[%s2191_s1 + $0xdb] sm:$0x8] %vm8_vm0, %v366_v30   ;;  %v378_v31 = vpop.permute.xlu0 %377  }
  0xb9   :  { %v390_v32 = vpop.permute.xlu1 %389   ;;  %895 = vst.msk [vmem:[%s2191_s1 + $0x1f] sm:$0x1] %vm8_vm0, %v378_v31   ;;  %896 = vst.msk [vmem:[%s2191_s1 + $0x5e] sm:$0x2] %vm8_vm0, %v378_v31  }
  0xba   :  { %897 = vst.msk [vmem:[%s2191_s1 + $0x9d] sm:$0x4] %vm8_vm0, %v378_v31   ;;  %898 = vst.msk [vmem:[%s2191_s1 + $0xdc] sm:$0x8] %vm8_vm0, %v378_v31  }
  0xbb   :  { %899 = vst.msk [vmem:[%s2191_s1 + $0x20] sm:$0x1] %vm8_vm0, %v390_v32   ;;  %900 = vst.msk [vmem:[%s2191_s1 + $0x5f] sm:$0x2] %vm8_vm0, %v390_v32  }
  0xbc   :  { %901 = vst.msk [vmem:[%s2191_s1 + $0x9e] sm:$0x4] %vm8_vm0, %v390_v32   ;;  %902 = vst.msk [vmem:[%s2191_s1 + $0xdd] sm:$0x8] %vm8_vm0, %v390_v32   ;;  %v402_v33 = vpop.permute.xlu0 %401  }
  0xbd   :  { %v414_v34 = vpop.permute.xlu1 %413   ;;  %903 = vst.msk [vmem:[%s2191_s1 + $0x21] sm:$0x1] %vm8_vm0, %v402_v33   ;;  %904 = vst.msk [vmem:[%s2191_s1 + $0x60] sm:$0x2] %vm8_vm0, %v402_v33  }
  0xbe   :  { %905 = vst.msk [vmem:[%s2191_s1 + $0x9f] sm:$0x4] %vm8_vm0, %v402_v33   ;;  %906 = vst.msk [vmem:[%s2191_s1 + $0xde] sm:$0x8] %vm8_vm0, %v402_v33  }
  0xbf   :  { %907 = vst.msk [vmem:[%s2191_s1 + $0x22] sm:$0x1] %vm8_vm0, %v414_v34   ;;  %908 = vst.msk [vmem:[%s2191_s1 + $0x61] sm:$0x2] %vm8_vm0, %v414_v34  }
  0xc0   :  { %909 = vst.msk [vmem:[%s2191_s1 + $0xa0] sm:$0x4] %vm8_vm0, %v414_v34   ;;  %910 = vst.msk [vmem:[%s2191_s1 + $0xdf] sm:$0x8] %vm8_vm0, %v414_v34   ;;  %v426_v35 = vpop.permute.xlu0 %425  }
  0xc1   :  { %v438_v36 = vpop.permute.xlu1 %437   ;;  %911 = vst.msk [vmem:[%s2191_s1 + $0x23] sm:$0x1] %vm8_vm0, %v426_v35   ;;  %912 = vst.msk [vmem:[%s2191_s1 + $0x62] sm:$0x2] %vm8_vm0, %v426_v35  }
  0xc2   :  { %913 = vst.msk [vmem:[%s2191_s1 + $0xa1] sm:$0x4] %vm8_vm0, %v426_v35   ;;  %914 = vst.msk [vmem:[%s2191_s1 + $0xe0] sm:$0x8] %vm8_vm0, %v426_v35  }
  0xc3   :  { %915 = vst.msk [vmem:[%s2191_s1 + $0x24] sm:$0x1] %vm8_vm0, %v438_v36   ;;  %916 = vst.msk [vmem:[%s2191_s1 + $0x63] sm:$0x2] %vm8_vm0, %v438_v36  }
  0xc4   :  { %917 = vst.msk [vmem:[%s2191_s1 + $0xa2] sm:$0x4] %vm8_vm0, %v438_v36   ;;  %918 = vst.msk [vmem:[%s2191_s1 + $0xe1] sm:$0x8] %vm8_vm0, %v438_v36   ;;  %v450_v37 = vpop.permute.xlu0 %449  }
  0xc5   :  { %v462_v38 = vpop.permute.xlu1 %461   ;;  %919 = vst.msk [vmem:[%s2191_s1 + $0x25] sm:$0x1] %vm8_vm0, %v450_v37   ;;  %920 = vst.msk [vmem:[%s2191_s1 + $0x64] sm:$0x2] %vm8_vm0, %v450_v37  }
  0xc6   :  { %921 = vst.msk [vmem:[%s2191_s1 + $0xa3] sm:$0x4] %vm8_vm0, %v450_v37   ;;  %922 = vst.msk [vmem:[%s2191_s1 + $0xe2] sm:$0x8] %vm8_vm0, %v450_v37  }
  0xc7   :  { %923 = vst.msk [vmem:[%s2191_s1 + $0x26] sm:$0x1] %vm8_vm0, %v462_v38   ;;  %924 = vst.msk [vmem:[%s2191_s1 + $0x65] sm:$0x2] %vm8_vm0, %v462_v38  }
  0xc8   :  { %925 = vst.msk [vmem:[%s2191_s1 + $0xa4] sm:$0x4] %vm8_vm0, %v462_v38   ;;  %926 = vst.msk [vmem:[%s2191_s1 + $0xe3] sm:$0x8] %vm8_vm0, %v462_v38   ;;  %v474_v39 = vpop.permute.xlu0 %473  }
  0xc9   :  { %v486_v40 = vpop.permute.xlu1 %485   ;;  %927 = vst.msk [vmem:[%s2191_s1 + $0x27] sm:$0x1] %vm8_vm0, %v474_v39   ;;  %928 = vst.msk [vmem:[%s2191_s1 + $0x66] sm:$0x2] %vm8_vm0, %v474_v39  }
  0xca   :  { %929 = vst.msk [vmem:[%s2191_s1 + $0xa5] sm:$0x4] %vm8_vm0, %v474_v39   ;;  %930 = vst.msk [vmem:[%s2191_s1 + $0xe4] sm:$0x8] %vm8_vm0, %v474_v39  }
  0xcb   :  { %931 = vst.msk [vmem:[%s2191_s1 + $0x28] sm:$0x1] %vm8_vm0, %v486_v40   ;;  %932 = vst.msk [vmem:[%s2191_s1 + $0x67] sm:$0x2] %vm8_vm0, %v486_v40  }
  0xcc   :  { %933 = vst.msk [vmem:[%s2191_s1 + $0xa6] sm:$0x4] %vm8_vm0, %v486_v40   ;;  %934 = vst.msk [vmem:[%s2191_s1 + $0xe5] sm:$0x8] %vm8_vm0, %v486_v40   ;;  %v498_v41 = vpop.permute.xlu0 %497  }
  0xcd   :  { %v510_v42 = vpop.permute.xlu1 %509   ;;  %935 = vst.msk [vmem:[%s2191_s1 + $0x29] sm:$0x1] %vm8_vm0, %v498_v41   ;;  %936 = vst.msk [vmem:[%s2191_s1 + $0x68] sm:$0x2] %vm8_vm0, %v498_v41  }
  0xce   :  { %937 = vst.msk [vmem:[%s2191_s1 + $0xa7] sm:$0x4] %vm8_vm0, %v498_v41   ;;  %938 = vst.msk [vmem:[%s2191_s1 + $0xe6] sm:$0x8] %vm8_vm0, %v498_v41  }
  0xcf   :  { %939 = vst.msk [vmem:[%s2191_s1 + $0x2a] sm:$0x1] %vm8_vm0, %v510_v42   ;;  %940 = vst.msk [vmem:[%s2191_s1 + $0x69] sm:$0x2] %vm8_vm0, %v510_v42  }
  0xd0   :  { %941 = vst.msk [vmem:[%s2191_s1 + $0xa8] sm:$0x4] %vm8_vm0, %v510_v42   ;;  %942 = vst.msk [vmem:[%s2191_s1 + $0xe7] sm:$0x8] %vm8_vm0, %v510_v42   ;;  %v522_v43 = vpop.permute.xlu0 %521  }
  0xd1   :  { %v534_v44 = vpop.permute.xlu1 %533   ;;  %943 = vst.msk [vmem:[%s2191_s1 + $0x2b] sm:$0x1] %vm8_vm0, %v522_v43   ;;  %944 = vst.msk [vmem:[%s2191_s1 + $0x6a] sm:$0x2] %vm8_vm0, %v522_v43  }
  0xd2   :  { %945 = vst.msk [vmem:[%s2191_s1 + $0xa9] sm:$0x4] %vm8_vm0, %v522_v43   ;;  %946 = vst.msk [vmem:[%s2191_s1 + $0xe8] sm:$0x8] %vm8_vm0, %v522_v43  }
  0xd3   :  { %947 = vst.msk [vmem:[%s2191_s1 + $0x2c] sm:$0x1] %vm8_vm0, %v534_v44   ;;  %948 = vst.msk [vmem:[%s2191_s1 + $0x6b] sm:$0x2] %vm8_vm0, %v534_v44  }
  0xd4   :  { %949 = vst.msk [vmem:[%s2191_s1 + $0xaa] sm:$0x4] %vm8_vm0, %v534_v44   ;;  %950 = vst.msk [vmem:[%s2191_s1 + $0xe9] sm:$0x8] %vm8_vm0, %v534_v44   ;;  %v546_v45 = vpop.permute.xlu0 %545  }
  0xd5   :  { %v558_v46 = vpop.permute.xlu1 %557   ;;  %951 = vst.msk [vmem:[%s2191_s1 + $0x2d] sm:$0x1] %vm8_vm0, %v546_v45   ;;  %952 = vst.msk [vmem:[%s2191_s1 + $0x6c] sm:$0x2] %vm8_vm0, %v546_v45  }
  0xd6   :  { %953 = vst.msk [vmem:[%s2191_s1 + $0xab] sm:$0x4] %vm8_vm0, %v546_v45   ;;  %954 = vst.msk [vmem:[%s2191_s1 + $0xea] sm:$0x8] %vm8_vm0, %v546_v45  }
  0xd7   :  { %955 = vst.msk [vmem:[%s2191_s1 + $0x2e] sm:$0x1] %vm8_vm0, %v558_v46   ;;  %956 = vst.msk [vmem:[%s2191_s1 + $0x6d] sm:$0x2] %vm8_vm0, %v558_v46  }
  0xd8   :  { %957 = vst.msk [vmem:[%s2191_s1 + $0xac] sm:$0x4] %vm8_vm0, %v558_v46   ;;  %958 = vst.msk [vmem:[%s2191_s1 + $0xeb] sm:$0x8] %vm8_vm0, %v558_v46   ;;  %v570_v47 = vpop.permute.xlu0 %569  }
  0xd9   :  { %v582_v48 = vpop.permute.xlu1 %581   ;;  %959 = vst.msk [vmem:[%s2191_s1 + $0x2f] sm:$0x1] %vm8_vm0, %v570_v47   ;;  %960 = vst.msk [vmem:[%s2191_s1 + $0x6e] sm:$0x2] %vm8_vm0, %v570_v47  }
  0xda   :  { %961 = vst.msk [vmem:[%s2191_s1 + $0xad] sm:$0x4] %vm8_vm0, %v570_v47   ;;  %962 = vst.msk [vmem:[%s2191_s1 + $0xec] sm:$0x8] %vm8_vm0, %v570_v47  }
  0xdb   :  { %963 = vst.msk [vmem:[%s2191_s1 + $0x30] sm:$0x1] %vm8_vm0, %v582_v48   ;;  %964 = vst.msk [vmem:[%s2191_s1 + $0x6f] sm:$0x2] %vm8_vm0, %v582_v48  }
  0xdc   :  { %965 = vst.msk [vmem:[%s2191_s1 + $0xae] sm:$0x4] %vm8_vm0, %v582_v48   ;;  %966 = vst.msk [vmem:[%s2191_s1 + $0xed] sm:$0x8] %vm8_vm0, %v582_v48   ;;  %v594_v49 = vpop.permute.xlu0 %593  }
  0xdd   :  { %v606_v50 = vpop.permute.xlu1 %605   ;;  %967 = vst.msk [vmem:[%s2191_s1 + $0x31] sm:$0x1] %vm8_vm0, %v594_v49   ;;  %968 = vst.msk [vmem:[%s2191_s1 + $0x70] sm:$0x2] %vm8_vm0, %v594_v49  }
  0xde   :  { %969 = vst.msk [vmem:[%s2191_s1 + $0xaf] sm:$0x4] %vm8_vm0, %v594_v49   ;;  %970 = vst.msk [vmem:[%s2191_s1 + $0xee] sm:$0x8] %vm8_vm0, %v594_v49  }
  0xdf   :  { %971 = vst.msk [vmem:[%s2191_s1 + $0x32] sm:$0x1] %vm8_vm0, %v606_v50   ;;  %972 = vst.msk [vmem:[%s2191_s1 + $0x71] sm:$0x2] %vm8_vm0, %v606_v50  }
  0xe0   :  { %973 = vst.msk [vmem:[%s2191_s1 + $0xb0] sm:$0x4] %vm8_vm0, %v606_v50   ;;  %974 = vst.msk [vmem:[%s2191_s1 + $0xef] sm:$0x8] %vm8_vm0, %v606_v50   ;;  %v618_v51 = vpop.permute.xlu0 %617  }
  0xe1   :  { %v630_v52 = vpop.permute.xlu1 %629   ;;  %975 = vst.msk [vmem:[%s2191_s1 + $0x33] sm:$0x1] %vm8_vm0, %v618_v51   ;;  %976 = vst.msk [vmem:[%s2191_s1 + $0x72] sm:$0x2] %vm8_vm0, %v618_v51  }
  0xe2   :  { %977 = vst.msk [vmem:[%s2191_s1 + $0xb1] sm:$0x4] %vm8_vm0, %v618_v51   ;;  %978 = vst.msk [vmem:[%s2191_s1 + $0xf0] sm:$0x8] %vm8_vm0, %v618_v51  }
  0xe3   :  { %979 = vst.msk [vmem:[%s2191_s1 + $0x34] sm:$0x1] %vm8_vm0, %v630_v52   ;;  %980 = vst.msk [vmem:[%s2191_s1 + $0x73] sm:$0x2] %vm8_vm0, %v630_v52  }
  0xe4   :  { %981 = vst.msk [vmem:[%s2191_s1 + $0xb2] sm:$0x4] %vm8_vm0, %v630_v52   ;;  %982 = vst.msk [vmem:[%s2191_s1 + $0xf1] sm:$0x8] %vm8_vm0, %v630_v52   ;;  %v642_v53 = vpop.permute.xlu0 %641  }
  0xe5   :  { %v654_v54 = vpop.permute.xlu1 %653   ;;  %983 = vst.msk [vmem:[%s2191_s1 + $0x35] sm:$0x1] %vm8_vm0, %v642_v53   ;;  %984 = vst.msk [vmem:[%s2191_s1 + $0x74] sm:$0x2] %vm8_vm0, %v642_v53  }
  0xe6   :  { %985 = vst.msk [vmem:[%s2191_s1 + $0xb3] sm:$0x4] %vm8_vm0, %v642_v53   ;;  %986 = vst.msk [vmem:[%s2191_s1 + $0xf2] sm:$0x8] %vm8_vm0, %v642_v53  }
  0xe7   :  { %987 = vst.msk [vmem:[%s2191_s1 + $0x36] sm:$0x1] %vm8_vm0, %v654_v54   ;;  %988 = vst.msk [vmem:[%s2191_s1 + $0x75] sm:$0x2] %vm8_vm0, %v654_v54  }
  0xe8   :  { %989 = vst.msk [vmem:[%s2191_s1 + $0xb4] sm:$0x4] %vm8_vm0, %v654_v54   ;;  %990 = vst.msk [vmem:[%s2191_s1 + $0xf3] sm:$0x8] %vm8_vm0, %v654_v54   ;;  %v666_v55 = vpop.permute.xlu0 %665  }
  0xe9   :  { %v678_v56 = vpop.permute.xlu1 %677   ;;  %991 = vst.msk [vmem:[%s2191_s1 + $0x37] sm:$0x1] %vm8_vm0, %v666_v55   ;;  %992 = vst.msk [vmem:[%s2191_s1 + $0x76] sm:$0x2] %vm8_vm0, %v666_v55  }
  0xea   :  { %993 = vst.msk [vmem:[%s2191_s1 + $0xb5] sm:$0x4] %vm8_vm0, %v666_v55   ;;  %994 = vst.msk [vmem:[%s2191_s1 + $0xf4] sm:$0x8] %vm8_vm0, %v666_v55  }
  0xeb   :  { %995 = vst.msk [vmem:[%s2191_s1 + $0x38] sm:$0x1] %vm8_vm0, %v678_v56   ;;  %996 = vst.msk [vmem:[%s2191_s1 + $0x77] sm:$0x2] %vm8_vm0, %v678_v56  }
  0xec   :  { %997 = vst.msk [vmem:[%s2191_s1 + $0xb6] sm:$0x4] %vm8_vm0, %v678_v56   ;;  %998 = vst.msk [vmem:[%s2191_s1 + $0xf5] sm:$0x8] %vm8_vm0, %v678_v56   ;;  %v690_v57 = vpop.permute.xlu0 %689  }
  0xed   :  { %v702_v58 = vpop.permute.xlu1 %701   ;;  %999 = vst.msk [vmem:[%s2191_s1 + $0x39] sm:$0x1] %vm8_vm0, %v690_v57   ;;  %1000 = vst.msk [vmem:[%s2191_s1 + $0x78] sm:$0x2] %vm8_vm0, %v690_v57  }
  0xee   :  { %1001 = vst.msk [vmem:[%s2191_s1 + $0xb7] sm:$0x4] %vm8_vm0, %v690_v57   ;;  %1002 = vst.msk [vmem:[%s2191_s1 + $0xf6] sm:$0x8] %vm8_vm0, %v690_v57  }
  0xef   :  { %1003 = vst.msk [vmem:[%s2191_s1 + $0x3a] sm:$0x1] %vm8_vm0, %v702_v58   ;;  %1004 = vst.msk [vmem:[%s2191_s1 + $0x79] sm:$0x2] %vm8_vm0, %v702_v58  }
  0xf0   :  { %1005 = vst.msk [vmem:[%s2191_s1 + $0xb8] sm:$0x4] %vm8_vm0, %v702_v58   ;;  %1006 = vst.msk [vmem:[%s2191_s1 + $0xf7] sm:$0x8] %vm8_vm0, %v702_v58   ;;  %v714_v59 = vpop.permute.xlu0 %713  }
  0xf1   :  { %v726_v60 = vpop.permute.xlu1 %725   ;;  %1007 = vst.msk [vmem:[%s2191_s1 + $0x3b] sm:$0x1] %vm8_vm0, %v714_v59   ;;  %1008 = vst.msk [vmem:[%s2191_s1 + $0x7a] sm:$0x2] %vm8_vm0, %v714_v59  }
  0xf2   :  { %1009 = vst.msk [vmem:[%s2191_s1 + $0xb9] sm:$0x4] %vm8_vm0, %v714_v59   ;;  %1010 = vst.msk [vmem:[%s2191_s1 + $0xf8] sm:$0x8] %vm8_vm0, %v714_v59  }
  0xf3   :  { %1011 = vst.msk [vmem:[%s2191_s1 + $0x3c] sm:$0x1] %vm8_vm0, %v726_v60   ;;  %1012 = vst.msk [vmem:[%s2191_s1 + $0x7b] sm:$0x2] %vm8_vm0, %v726_v60  }
  0xf4   :  { %1013 = vst.msk [vmem:[%s2191_s1 + $0xba] sm:$0x4] %vm8_vm0, %v726_v60   ;;  %1014 = vst.msk [vmem:[%s2191_s1 + $0xf9] sm:$0x8] %vm8_vm0, %v726_v60   ;;  %v738_v61 = vpop.permute.xlu0 %737  }
  0xf5   :  { %v750_v62 = vpop.permute.xlu1 %749   ;;  %1015 = vst.msk [vmem:[%s2191_s1 + $0x3d] sm:$0x1] %vm8_vm0, %v738_v61   ;;  %1016 = vst.msk [vmem:[%s2191_s1 + $0x7c] sm:$0x2] %vm8_vm0, %v738_v61  }
  0xf6   :  { %1017 = vst.msk [vmem:[%s2191_s1 + $0xbb] sm:$0x4] %vm8_vm0, %v738_v61   ;;  %1018 = vst.msk [vmem:[%s2191_s1 + $0xfa] sm:$0x8] %vm8_vm0, %v738_v61  }
  0xf7   :  { %1019 = vst.msk [vmem:[%s2191_s1 + $0x3e] sm:$0x1] %vm8_vm0, %v750_v62   ;;  %1020 = vst.msk [vmem:[%s2191_s1 + $0x7d] sm:$0x2] %vm8_vm0, %v750_v62  }
  0xf8   :  { %1021 = vst.msk [vmem:[%s2191_s1 + $0xbc] sm:$0x4] %vm8_vm0, %v750_v62   ;;  %1022 = vst.msk [vmem:[%s2191_s1 + $0xfb] sm:$0x8] %vm8_vm0, %v750_v62   ;;  %v762_v63 = vpop.permute.xlu0 %761  }
  0xf9   :  { %1023 = vst.msk [vmem:[%s2191_s1 + $0x3f] sm:$0x1] %vm8_vm0, %v762_v63   ;;  %1024 = vst.msk [vmem:[%s2191_s1 + $0x7e] sm:$0x2] %vm8_vm0, %v762_v63  }
  0xfa   :  { %1025 = vst.msk [vmem:[%s2191_s1 + $0xbd] sm:$0x4] %vm8_vm0, %v762_v63   ;;  %1026 = vst.msk [vmem:[%s2191_s1 + $0xfc] sm:$0x8] %vm8_vm0, %v762_v63  }

// kernel: ae_container_forward.1
= control target key start
LH: loop header
LB: loop body
LE: loop exit
PB: predicated region body
PF: predicated region fallthrough
CT: control target
= control target key end

     0   :  { %10 = vsyncpa [#allocation3], 0  ;;  %s1488_s18 = smov 0   ;;  %s1490_s19 = smov 0   ;;  %s1933_s0 = inlined_call_operand.vmem [shape: f32[2,128,256], index: 0, kind: input, shape index: {}]   ;;  %s1934_s1 = inlined_call_operand.hbm [shape: bf16[256,128], index: 1, kind: input, shape index: {}]   ;;  %s1935_s2 = inlined_call_operand.vmem [shape: f32[256,1], index: 2, kind: input, shape index: {}]   ;;  %s1936_s3 = inlined_call_operand.vmem [shape: bf16[64,256], index: 3, kind: input, shape index: {}]   ;;  %s1937_s4 = inlined_call_operand.vmem [shape: f32[64,1], index: 4, kind: input, shape index: {}]   ;;  %s1938_s5 = inlined_call_operand.vmem [shape: bf16[2,64,256], index: 5, kind: output, shape index: {}]  }
   0x1   :  { %s1492_s20 = smov 0  }
   0x2 LB: > { %s1277_s21 = sadd.s32 4294967295, %s1452_s20   ;;  %s28_s22 = sadd.s32 1, %s1448_s19  ;;  %s1452_s20 = sphi %s1492_s20, %s16_s20   ;;  %s1448_s19 = sphi %s1490_s19, %s1960_s19   ;;  %s1444_s18 = sphi %s1488_s18, %s1959_s18  }
   0x3   : > { %p30_p0 = scmp.ge.s32.totalorder %s28_s22, 2  ;;  %p1279_p1 = scmp.ge.s32.totalorder %s1452_s20, 1 }
   0x4   : > { %p173_p2 = scmp.lt.s32.totalorder %s1452_s20, 3  ;;  %p1513_p4 = scmp.eq.s32.totalorder %s1277_s21, 0 }
   0x5   : > { %s1962_s22 = smov (%p30_p0, %s28_s22), 0  ;;  %s1454_s25 = smov [#allocation2]  }
   0x6   : > { %p1509_p3 = pnand %p1279_p1, %p173_p2  ;;  %s185_s26 = sshll.u32 %s1454_s25, 4  ;;  %s186_s26 = int_to_ptr.vmem [resolvable:$true] %s185_s26 }
   0x7   : > { %s1411_s27 = scalar_lea.vmem %s186_s26, 2048  ;;  %p1419_p11 = scmp.lt.s32.totalorder %s186_s26, %s186_s26 }
   0x8   : > { %p1336_p5 = pneg %p1509_p3  ;;  %p1412_p8 = scmp.ne.s32.totalorder %s186_s26, %s1411_s27 }
   0x9   : > { %p1420_p12 = scmp.lt.s32.totalorder %s1411_s27, %s1411_s27 }
   0xa   : > { %p1337_p6 = pnand %p1513_p4, %p1336_p5 }
   0xb   : > { %p1421_p13 = por %p1420_p12, %p1419_p11 }
   0xc   : > { %p1402_p7 = pneg %p1337_p6 }
   0xe   : > { %p1414_p9 = pnand %p1412_p8, %p1402_p7 }
  0x10   : > { %p1415_p10 = pneg %p1414_p9 }
  0x12   : > { %p1422_p0 = pnand %p1421_p13, %p1415_p10 }
  0x14   : > { %1425 = shalt.err (!%p1422_p0)
}
  0x15   : > { %s1455_s28 = smov 64   ;;  %s1456_s29 = smov 4  }
  0x16   : > { %1339 = dma.hbm_to_vmem [thread:$0]  (!%p1337_p6), %s1934_s1, 2048, %s186_s26, [#allocation3], %s1455_s28, %s1455_s28, %s1456_s29  }
  0x17   : > { %223 = sbr.rel (%p1509_p3) target bundleno = 656 (0x290), region = 40 }
  0x1c   : > { %1439 = dma.done.wait (%p1513_p4), [#allocation3], 2048  }
  0x1d   : > { %1441 = vsyncadd (%p1513_p4), [#allocation3], 4294965248  ;;  %p260_p1 = scmp.lt.s32.totalorder %s1444_s18, 1  ;;  %v1457_v0 = vmov 0   ;;  %v374_v35 = vld [vmem:[%s1935_s2 + $0x70] sm:$0xff]  ;;  %v372_v38 = vld [vmem:[%s1935_s2 + $0x60] sm:$0xff] }
  0x1e   : > { %680 = vmatprep.mubr.bf16.mxu0 %v1457_v0  ;;  %1370 = vset.pattern.permute.xlu0 %v1457_v0  ;;  %v375_v40 = vld [vmem:[%s1935_s2 + $0x78] sm:$0xff]  ;;  %v373_v41 = vld [vmem:[%s1935_s2 + $0x68] sm:$0xff]  ;;  %v370_v48 = vld [vmem:[%s1935_s2 + $0x50] sm:$0xff] }
  0x1f   : > { %s1964_s18 = smov (!%p260_p1, %s1444_s18), 1  ;;  %1371 = vset.pattern.permute.xlu1 %v1457_v0  ;;  %464 = vperm.xlu0 %1370, %v374_v35   ;;  %v371_v49 = vld [vmem:[%s1935_s2 + $0x58] sm:$0xff]  ;;  %v368_v54 = vld [vmem:[%s1935_s2 + $0x40] sm:$0xff]  ;;  %v369_v55 = vld [vmem:[%s1935_s2 + $0x48] sm:$0xff] }
  0x20   : > { %s1322_s7 = sshll.u32 %s1964_s18, 8  ;;  %454 = vperm.xlu1 %1371, %v372_v38   ;;  %v1372_v57 = vld [vmem:[#allocation2] sm:$0xff]   ;;  %v366_v58 = vld [vmem:[%s1935_s2 + $0x30] sm:$0xff]  ;;  %v367_v59 = vld [vmem:[%s1935_s2 + $0x38] sm:$0xff]  ;;  %s1323_s27 = sshll.u32 %s1964_s18, 6 }
  0x21   : > { %s1541_s10 = scalar_lea.vmem %s1933_s0, %s1322_s7  ;;  %v364_v60 = vld [vmem:[%s1935_s2 + $0x20] sm:$0xff]  ;;  %v365_v61 = vld [vmem:[%s1935_s2 + $0x28] sm:$0xff]  ;;  %v362_v62 = vld [vmem:[%s1935_s2 + $0x10] sm:$0xff]  ;;  %s1914_s30 = scalar_lea.vmem %s1938_s5, %s1323_s27 }
  0x22   : > { %v309_v1 = vld [vmem:[%s1541_s10 + $0xe8] sm:$0xff]  ;;  %v311_v2 = vld [vmem:[%s1541_s10 + $0xf8] sm:$0xff]  ;;  %v308_v3 = vld [vmem:[%s1541_s10 + $0xe0] sm:$0xff] }
  0x23   : > { %v327_v4 = vpack.c.bf16 %v311_v2, %v309_v1  ;;  %v310_v5 = vld [vmem:[%s1541_s10 + $0xf0] sm:$0xff]  ;;  %v305_v6 = vld [vmem:[%s1541_s10 + $0xc8] sm:$0xff]  ;;  %v307_v7 = vld [vmem:[%s1541_s10 + $0xd8] sm:$0xff]  ;;  %469 = vperm.xlu0 %1370, %v375_v40  }
  0x24   : > { %v326_v8 = vpack.c.bf16 %v310_v5, %v308_v3  ;;  %v325_v9 = vpack.c.bf16 %v307_v7, %v305_v6  ;;  %v304_v10 = vld [vmem:[%s1541_s10 + $0xc0] sm:$0xff]  ;;  %v306_v11 = vld [vmem:[%s1541_s10 + $0xd0] sm:$0xff]  ;;  %v301_v12 = vld [vmem:[%s1541_s10 + $0xa8] sm:$0xff]  ;;  %459 = vperm.xlu1 %1371, %v373_v41  }
  0x25   : > { %648 = vmatprep.subr.bf16.mxu0 %v327_v4  ;;  %v303_v13 = vld [vmem:[%s1541_s10 + $0xb8] sm:$0xff]  ;;  %v324_v14 = vpack.c.bf16 %v306_v11, %v304_v10  ;;  %v300_v16 = vld [vmem:[%s1541_s10 + $0xa0] sm:$0xff]  ;;  %v302_v17 = vld [vmem:[%s1541_s10 + $0xb0] sm:$0xff] }
  0x26   : > { %649 = vmatpush1.bf16.msra.mxu0 %v326_v8  ;;  %v323_v15 = vpack.c.bf16 %v303_v13, %v301_v12  ;;  %v297_v18 = vld [vmem:[%s1541_s10 + $0x88] sm:$0xff]  ;;  %v299_v19 = vld [vmem:[%s1541_s10 + $0x98] sm:$0xff]  ;;  %v322_v20 = vpack.c.bf16 %v302_v17, %v300_v16  ;;  %v296_v22 = vld [vmem:[%s1541_s10 + $0x80] sm:$0xff] }
  0x27   : > { %650 = vmatprep.subr.bf16.mxu0 %v325_v9  ;;  %v321_v21 = vpack.c.bf16 %v299_v19, %v297_v18  ;;  %v298_v23 = vld [vmem:[%s1541_s10 + $0x90] sm:$0xff]  ;;  %v293_v24 = vld [vmem:[%s1541_s10 + $0x68] sm:$0xff]  ;;  %v295_v25 = vld [vmem:[%s1541_s10 + $0x78] sm:$0xff]  ;;  %444 = vperm.xlu0 %1370, %v370_v48  }
  0x28   : > { %v292_v26 = vld [vmem:[%s1541_s10 + $0x60] sm:$0xff]  ;;  %v320_v27 = vpack.c.bf16 %v298_v23, %v296_v22  ;;  %v294_v28 = vld [vmem:[%s1541_s10 + $0x70] sm:$0xff]  ;;  %v319_v29 = vpack.c.bf16 %v295_v25, %v293_v24  ;;  %v289_v30 = vld [vmem:[%s1541_s10 + $0x48] sm:$0xff]  ;;  %449 = vperm.xlu1 %1371, %v371_v49  }
  0x29   : > { %v291_v31 = vld [vmem:[%s1541_s10 + $0x58] sm:$0xff]  ;;  %v288_v32 = vld [vmem:[%s1541_s10 + $0x40] sm:$0xff]  ;;  %v318_v33 = vpack.c.bf16 %v294_v28, %v292_v26  ;;  %v290_v34 = vld [vmem:[%s1541_s10 + $0x50] sm:$0xff] }
  0x2a   : > { %651 = vmatpush1.bf16.msra.mxu0 %v324_v14  ;;  %v317_v36 = vpack.c.bf16 %v291_v31, %v289_v30  ;;  %v285_v37 = vld [vmem:[%s1541_s10 + $0x28] sm:$0xff]  ;;  %v287_v39 = vld [vmem:[%s1541_s10 + $0x38] sm:$0xff]  ;;  %v316_v42 = vpack.c.bf16 %v290_v34, %v288_v32  ;;  %v284_v43 = vld [vmem:[%s1541_s10 + $0x20] sm:$0xff] }
  0x2b   : > { %652 = vmatprep.subr.bf16.mxu0 %v323_v15  ;;  %v315_v44 = vpack.c.bf16 %v287_v39, %v285_v37  ;;  %v286_v45 = vld [vmem:[%s1541_s10 + $0x30] sm:$0xff]  ;;  %v281_v46 = vld [vmem:[%s1541_s10 + $0x8] sm:$0xff]  ;;  %v283_v47 = vld [vmem:[%s1541_s10 + $0x18] sm:$0xff]  ;;  %434 = vperm.xlu0 %1370, %v368_v54  }
  0x2c   : > { %v314_v50 = vpack.c.bf16 %v286_v45, %v284_v43  ;;  %v313_v51 = vpack.c.bf16 %v283_v47, %v281_v46  ;;  %v280_v52 = vld [vmem:[%s1541_s10] sm:$0xff]  ;;  %v282_v53 = vld [vmem:[%s1541_s10 + $0x10] sm:$0xff]  ;;  %439 = vperm.xlu1 %1371, %v369_v55   ;;  %v1373_v63 = vld [vmem:[#allocation2 + $0x8] sm:$0xff]  }
  0x2d   : > { %v312_v56 = vpack.c.bf16 %v282_v53, %v280_v52  ;;  %v363_v1 = vld [vmem:[%s1935_s2 + $0x18] sm:$0xff]  ;;  %v360_v2 = vld [vmem:[%s1935_s2] sm:$0xff]  ;;  %v361_v3 = vld [vmem:[%s1935_s2 + $0x8] sm:$0xff] }
  0x2e   : > { %653 = vmatpush1.bf16.msra.mxu0 %v322_v20  ;;  %v390_v4 = vld [vmem:[%s1935_s2 + $0xf0] sm:$0xff]  ;;  %v391_v6 = vld [vmem:[%s1935_s2 + $0xf8] sm:$0xff]  ;;  %v388_v7 = vld [vmem:[%s1935_s2 + $0xe0] sm:$0xff] }
  0x2f   : > { %654 = vmatprep.subr.bf16.mxu0 %v321_v21  ;;  %424 = vperm.xlu0 %1370, %v366_v58   ;;  %v1374_v5 = vld [vmem:[#allocation2 + $0x10] sm:$0xff]   ;;  %v389_v8 = vld [vmem:[%s1935_s2 + $0xe8] sm:$0xff]  ;;  %v1375_v10 = vld [vmem:[#allocation2 + $0x18] sm:$0xff]  }
  0x30   : > { %429 = vperm.xlu1 %1371, %v367_v59   ;;  %v386_v9 = vld [vmem:[%s1935_s2 + $0xd0] sm:$0xff]  ;;  %v387_v11 = vld [vmem:[%s1935_s2 + $0xd8] sm:$0xff]  ;;  %v384_v12 = vld [vmem:[%s1935_s2 + $0xc0] sm:$0xff] }
  0x31   : > { %v385_v13 = vld [vmem:[%s1935_s2 + $0xc8] sm:$0xff]  ;;  %v382_v14 = vld [vmem:[%s1935_s2 + $0xb0] sm:$0xff]  ;;  %v1376_v15 = vld [vmem:[#allocation2 + $0x20] sm:$0xff]  }
  0x32   : > { %655 = vmatpush1.bf16.msra.mxu0 %v320_v27  ;;  %v383_v16 = vld [vmem:[%s1935_s2 + $0xb8] sm:$0xff]  ;;  %v380_v17 = vld [vmem:[%s1935_s2 + $0xa0] sm:$0xff]  ;;  %v381_v18 = vld [vmem:[%s1935_s2 + $0xa8] sm:$0xff] }
  0x33   : > { %656 = vmatprep.subr.bf16.mxu0 %v319_v29  ;;  %414 = vperm.xlu0 %1370, %v364_v60   ;;  %v378_v19 = vld [vmem:[%s1935_s2 + $0x90] sm:$0xff]  ;;  %v1377_v20 = vld [vmem:[#allocation2 + $0x28] sm:$0xff]   ;;  %v379_v21 = vld [vmem:[%s1935_s2 + $0x98] sm:$0xff] }
  0x34   : > { %419 = vperm.xlu1 %1371, %v365_v61   ;;  %v376_v22 = vld [vmem:[%s1935_s2 + $0x80] sm:$0xff]  ;;  %v377_v23 = vld [vmem:[%s1935_s2 + $0x88] sm:$0xff]  ;;  %v1378_v25 = vld [vmem:[#allocation2 + $0x30] sm:$0xff]  }
  0x35   : > { %v945_v24 = vld [vmem:[%s1937_s4] sm:$0xff]  ;;  %v946_v26 = vld [vmem:[%s1937_s4 + $0x8] sm:$0xff]  ;;  %v947_v27 = vld [vmem:[%s1937_s4 + $0x10] sm:$0xff] }
  0x36   : > { %657 = vmatpush1.bf16.msra.mxu0 %v318_v33  ;;  %v948_v28 = vld [vmem:[%s1937_s4 + $0x18] sm:$0xff]  ;;  %v949_v29 = vld [vmem:[%s1937_s4 + $0x20] sm:$0xff]  ;;  %v950_v31 = vld [vmem:[%s1937_s4 + $0x28] sm:$0xff] }
  0x37   : > { %658 = vmatprep.subr.bf16.mxu0 %v317_v36  ;;  %404 = vperm.xlu0 %1370, %v362_v62   ;;  %v1379_v30 = vld [vmem:[#allocation2 + $0x38] sm:$0xff]   ;;  %v951_v32 = vld [vmem:[%s1937_s4 + $0x30] sm:$0xff]  ;;  %v1380_v34 = vld [vmem:[#allocation2 + $0x40] sm:$0xff]  }
  0x38   : > { %409 = vperm.xlu1 %1371, %v363_v1   ;;  %v952_v33 = vld [vmem:[%s1937_s4 + $0x38] sm:$0xff]  ;;  %v1381_v35 = vld [vmem:[#allocation2 + $0x48] sm:$0xff]   ;;  %v1382_v36 = vld [vmem:[#allocation2 + $0x50] sm:$0xff]  }
  0x39   : > { %v1383_v37 = vld [vmem:[#allocation2 + $0x58] sm:$0xff]   ;;  %v1384_v38 = vld [vmem:[#allocation2 + $0x60] sm:$0xff]   ;;  %v1385_v39 = vld [vmem:[#allocation2 + $0x68] sm:$0xff]  }
  0x3a   : > { %659 = vmatpush1.bf16.msra.mxu0 %v316_v42  ;;  %v1386_v40 = vld [vmem:[#allocation2 + $0x70] sm:$0xff]   ;;  %v1387_v41 = vld [vmem:[#allocation2 + $0x78] sm:$0xff]  }
  0x3b   : > { %660 = vmatprep.subr.bf16.mxu0 %v315_v44  ;;  %394 = vperm.xlu0 %1370, %v360_v2  }
  0x3c   : > { %399 = vperm.xlu1 %1371, %v361_v3  }
  0x3e   : > { %661 = vmatpush1.bf16.msra.mxu0 %v314_v50 }
  0x3f   : > { %662 = vmatprep.subr.bf16.mxu0 %v313_v51  ;;  %544 = vperm.xlu0 %1370, %v390_v4  }
  0x40   : > { %549 = vperm.xlu1 %1371, %v391_v6  }
  0x42   : > { %663 = vmatpush1.bf16.msra.mxu0 %v312_v56 }
  0x43   : > { %534 = vperm.xlu0 %1370, %v388_v7  }
  0x44   : > { %539 = vperm.xlu1 %1371, %v389_v8  }
  0x45   : > { %681 = vmatmul.mubr.bf16.vlgmr.msra.gmra.mxu0 %v1372_v57 }
  0x46   : > { %690 = vmatprep.mubr.bf16.mxu0 %v1457_v0 }
  0x47   : > { %524 = vperm.xlu0 %1370, %v386_v9  }
  0x48   : > { %529 = vperm.xlu1 %1371, %v387_v11  }
  0x4b   : > { %514 = vperm.xlu0 %1370, %v384_v12  }
  0x4c   : > { %519 = vperm.xlu1 %1371, %v385_v13  }
  0x4d   : > { %691 = vmatmul.mubr.bf16.gmra.mxu0 %v1373_v63 }
  0x4e   : > { %700 = vmatprep.mubr.bf16.mxu0 %v1457_v0 }
  0x4f   : > { %504 = vperm.xlu0 %1370, %v382_v14  }
  0x50   : > { %509 = vperm.xlu1 %1371, %v383_v16  }
  0x53   : > { %494 = vperm.xlu0 %1370, %v380_v17  }
  0x54   : > { %499 = vperm.xlu1 %1371, %v381_v18  }
  0x55   : > { %701 = vmatmul.mubr.bf16.gmra.mxu0 %v1374_v5 }
  0x56   : > { %710 = vmatprep.mubr.bf16.mxu0 %v1457_v0 }
  0x57   : > { %484 = vperm.xlu0 %1370, %v378_v19  }
  0x58   : > { %489 = vperm.xlu1 %1371, %v379_v21  }
  0x5b   : > { %474 = vperm.xlu0 %1370, %v376_v22  }
  0x5c   : > { %479 = vperm.xlu1 %1371, %v377_v23  }
  0x5d   : > { %711 = vmatmul.mubr.bf16.gmra.mxu0 %v1375_v10 }
  0x5e   : > { %720 = vmatprep.mubr.bf16.mxu0 %v1457_v0 }
  0x5f   : > { %955 = vperm.xlu0 %1370, %v945_v24  }
  0x60   : > { %960 = vperm.xlu1 %1371, %v946_v26  }
  0x63   : > { %965 = vperm.xlu0 %1370, %v947_v27  }
  0x64   : > { %970 = vperm.xlu1 %1371, %v948_v28  }
  0x65   : > { %721 = vmatmul.mubr.bf16.gmra.mxu0 %v1376_v15 }
  0x66   : > { %730 = vmatprep.mubr.bf16.mxu0 %v1457_v0 }
  0x67   : > { %975 = vperm.xlu0 %1370, %v949_v29  }
  0x68   : > { %980 = vperm.xlu1 %1371, %v950_v31  }
  0x6b   : > { %985 = vperm.xlu0 %1370, %v951_v32  }
  0x6c   : > { %990 = vperm.xlu1 %1371, %v952_v33  }
  0x6d   : > { %731 = vmatmul.mubr.bf16.gmra.mxu0 %v1377_v20 }
  0x6e   : > { %740 = vmatprep.mubr.bf16.mxu0 %v1457_v0 }
  0x75   : > { %741 = vmatmul.mubr.bf16.gmra.mxu0 %v1378_v25 }
  0x76   : > { %750 = vmatprep.mubr.bf16.mxu0 %v1457_v0 }
  0x7d   : > { %751 = vmatmul.mubr.bf16.gmra.mxu0 %v1379_v30 }
  0x7e   : > { %760 = vmatprep.mubr.bf16.mxu0 %v1457_v0 }
  0x85   : > { %761 = vmatmul.mubr.bf16.gmra.mxu0 %v1380_v34 }
  0x86   : > { %770 = vmatprep.mubr.bf16.mxu0 %v1457_v0 }
  0x8d   : > { %771 = vmatmul.mubr.bf16.gmra.mxu0 %v1381_v35 }
  0x8e   : > { %780 = vmatprep.mubr.bf16.mxu0 %v1457_v0 }
  0x95   : > { %781 = vmatmul.mubr.bf16.gmra.mxu0 %v1382_v36 }
  0x96   : > { %790 = vmatprep.mubr.bf16.mxu0 %v1457_v0 }
  0x9a   : > { %v1710_v42 = vpop.permute.xlu0 %464 }
  0x9b   : > { %v1712_v43 = vpop.permute.xlu1 %454 }
  0x9d   : > { %791 = vmatmul.mubr.bf16.gmra.mxu0 %v1383_v37  ;;  %v1390_v37 = vld [vmem:[%s1936_s3 + $0x4] ss:$8 sps:$4 sm:$0xff]  }
  0x9e   : > { %800 = vmatprep.mubr.bf16.mxu0 %v1457_v0  ;;  %v1714_v44 = vpop.permute.xlu0 %469  ;;  %1065 = vmatprep.mubr.bf16.mxu1 %v1390_v37 }
  0x9f   : > { %v1716_v45 = vpop.permute.xlu1 %459 }
  0xa2   : > { %v1718_v46 = vpop.permute.xlu0 %444 }
  0xa3   : > { %v1720_v47 = vpop.permute.xlu1 %449 }
  0xa5   : > { %801 = vmatmul.mubr.bf16.gmra.mxu0 %v1384_v38 }
  0xa6   : > { %810 = vmatprep.mubr.bf16.mxu0 %v1457_v0  ;;  %v1722_v48 = vpop.permute.xlu0 %434 }
  0xa7   : > { %v1724_v49 = vpop.permute.xlu1 %439 }
  0xaa   : > { %v1726_v50 = vpop.permute.xlu0 %424 }
  0xad   : > { %811 = vmatmul.mubr.bf16.gmra.mxu0 %v1385_v39 }
  0xae   : > { %820 = vmatprep.mubr.bf16.mxu0 %v1457_v0  ;;  %v1730_v51 = vpop.permute.xlu0 %414 }
  0xb2   : > { %v405_v53 = vpop.permute.xlu0 %404 }
  0xb5   : > { %821 = vmatmul.mubr.bf16.gmra.mxu0 %v1386_v40 }
  0xb6   : > { %830 = vmatprep.mubr.bf16.mxu0 %v1457_v0  ;;  %v1728_v0 = vpop.permute.xlu1 %429  ;;  %v395_v55 = vpop.permute.xlu0 %394 }
  0xba   : > { %v1732_v52 = vpop.permute.xlu1 %419  ;;  %v1750_v26 = vpop.permute.xlu0 %544 }
  0xbd   : > { %831 = vmatmul.mubr.bf16.gmra.mxu0 %v1387_v41 }
  0xbe   : > { %v410_v54 = vpop.permute.xlu1 %409  ;;  %v1760_v31 = vpop.permute.xlu0 %534 }
  0xc2   : > { %v400_v58 = vpop.permute.xlu1 %399  ;;  %v1766_v36 = vpop.permute.xlu0 %524 }
  0xc6   : > { %v1754_v28 = vpop.permute.xlu1 %549 }
  0xca   : > { %v1762_v33 = vpop.permute.xlu1 %539 }
  0xce   : > { %v1773_v39 = vpop.permute.xlu1 %529 }
 0x105   : > { %v682_v56 = vpop.f32.mrf.mxu0 }
 0x106   : > { %v683_v59 = vadd.f32 %v682_v56, %v395_v55 }
 0x107   : > { %v684_v57 = vpop.f32.mrf.mxu0 }
 0x108   : > { %v685_v61 = vadd.f32 %v684_v57, %v395_v55  ;;  %v841_v1 = vmax.f32 %v683_v59, 0.0  ;;  %v1777_v55 = vpop.permute.xlu1 %519 }
 0x109   : > { %v686_v60 = vpop.f32.mrf.mxu0  ;;  %1948 = vst [vmem:[#allocation6_spill] sm:$0xff] %v1777_v55 }
 0x10a   : > { %v687_v62 = vadd.f32 %v686_v60, %v400_v58  ;;  %v842_v5 = vmax.f32 %v685_v61, 0.0 }
 0x10b   : > { %v688_v63 = vpop.f32.mrf.mxu0 }
 0x10c   : > { %v843_v2 = vmax.f32 %v687_v62, 0.0  ;;  %v689_v3 = vadd.f32 %v688_v63, %v400_v58  ;;  %v1781_v60 = vpop.permute.xlu1 %509 }
 0x10d   : > { %v692_v4 = vpop.f32.mrf.mxu0  ;;  %1950 = vst [vmem:[#allocation8_spill] sm:$0xff] %v1781_v60 }
 0x10e   : > { %v1734_v6 = vpack.c.bf16 %v843_v2, %v841_v1  ;;  %v844_v7 = vmax.f32 %v689_v3, 0.0  ;;  %v693_v10 = vadd.f32 %v692_v4, %v405_v53 }
 0x10f   : > { %v694_v8 = vpop.f32.mrf.mxu0 }
 0x110   : > { %v1736_v9 = vpack.c.bf16 %v844_v7, %v842_v5  ;;  %v695_v12 = vadd.f32 %v694_v8, %v405_v53  ;;  %v845_v15 = vmax.f32 %v693_v10, 0.0  ;;  %v1775_v53 = vpop.permute.xlu0 %514  ;;  %v1785_v2 = vpop.permute.xlu1 %499 }
 0x111   : > { %v696_v11 = vpop.f32.mrf.mxu0  ;;  %1947 = vst [vmem:[#allocation5_spill] sm:$0xff] %v1775_v53  ;;  %1952 = vst [vmem:[#allocation10_spill] sm:$0xff] %v1785_v2 }
 0x112   : > { %v697_v13 = vadd.f32 %v696_v11, %v410_v54  ;;  %v846_v19 = vmax.f32 %v695_v12, 0.0 }
 0x113   : > { %v698_v14 = vpop.f32.mrf.mxu0 }
 0x114   : > { %v847_v16 = vmax.f32 %v697_v13, 0.0  ;;  %v699_v17 = vadd.f32 %v698_v14, %v410_v54  ;;  %v1779_v58 = vpop.permute.xlu0 %504  ;;  %v1789_v8 = vpop.permute.xlu1 %489 }
 0x115   : > { %v1738_v18 = vpop.f32.mrf.mxu0  ;;  %1949 = vst [vmem:[#allocation7_spill] sm:$0xff] %v1779_v58 }
 0x116   : > { %v1740_v20 = vpack.c.bf16 %v847_v16, %v845_v15  ;;  %v848_v21 = vmax.f32 %v699_v17, 0.0 }
 0x117   : > { %v1742_v22 = vpop.f32.mrf.mxu0 }
 0x118   : > { %v1744_v23 = vpack.c.bf16 %v848_v21, %v846_v19  ;;  %v1783_v63 = vpop.permute.xlu0 %494 }
 0x119   : > { %v1746_v24 = vpop.f32.mrf.mxu0  ;;  %1951 = vst [vmem:[#allocation9_spill] sm:$0xff] %v1783_v63 }
 0x11b   : > { %v1748_v25 = vpop.f32.mrf.mxu0 }
 0x11c   : > { %v1787_v5 = vpop.permute.xlu0 %484 }
 0x11d   : > { %v1752_v27 = vpop.f32.mrf.mxu0 }
 0x11f   : > { %v1756_v29 = vpop.f32.mrf.mxu0 }
 0x120   : > { %v475_v21 = vpop.permute.xlu0 %474 }
 0x121   : > { %v1758_v30 = vpop.f32.mrf.mxu0 }
 0x123   : > { %v718_v32 = vpop.f32.mrf.mxu0 }
 0x125   : > { %v1764_v34 = vpop.f32.mrf.mxu0 }
 0x127   : > { %v724_v35 = vpop.f32.mrf.mxu0 }
 0x129   : > { %v1771_v38 = vpop.f32.mrf.mxu0 }
 0x12b   : > { %v728_v40 = vpop.f32.mrf.mxu0 }
 0x12d   : > { %v732_v41 = vpop.f32.mrf.mxu0 }
 0x12f   : > { %v734_v54 = vpop.f32.mrf.mxu0 }
 0x131   : > { %v736_v56 = vpop.f32.mrf.mxu0 }
 0x133   : > { %v738_v57 = vpop.f32.mrf.mxu0 }
 0x134   : > { %v739_v63 = vadd.f32 %v738_v57, %v1720_v47 }
 0x135   : > { %v742_v59 = vpop.f32.mrf.mxu0 }
 0x137   : > { %v744_v61 = vpop.f32.mrf.mxu0 }
 0x138   : > { %v745_v15 = vadd.f32 %v744_v61, %v1712_v43 }
 0x139   : > { %v746_v62 = vpop.f32.mrf.mxu0 }
 0x13a   : > { %v747_v17 = vadd.f32 %v746_v62, %v1716_v45  ;;  %v866_v61 = vmax.f32 %v745_v15, 0.0  ;;  %v737_v62 = vadd.f32 %v736_v56, %v1720_v47 }
 0x13b   : > { %v748_v1 = vpop.f32.mrf.mxu0 }
 0x13c   : > { %v749_v10 = vadd.f32 %v748_v1, %v1716_v45  ;;  %v729_v45 = vadd.f32 %v728_v40, %v1724_v49 }
 0x13d   : > { %v752_v3 = vpop.f32.mrf.mxu0 }
 0x13e   : > { %v753_v13 = vadd.f32 %v752_v3, %v1710_v42  ;;  %v868_v2 = vmax.f32 %v749_v10, 0.0  ;;  %v735_v3 = vadd.f32 %v734_v54, %v1718_v46  ;;  %v864_v10 = vmax.f32 %v739_v63, 0.0 }
 0x13f   : > { %v754_v4 = vpop.f32.mrf.mxu0  ;;  %v733_v54 = vadd.f32 %v732_v41, %v1718_v46  ;;  %v727_v63 = vadd.f32 %v1771_v38, %v1724_v49  ;;  %v723_v41 = vadd.f32 %v1764_v34, %v1722_v48 }
 0x140   : > { %v755_v11 = vadd.f32 %v754_v4, %v1710_v42  ;;  %v743_v4 = vadd.f32 %v742_v59, %v1712_v43  ;;  %v480_v42 = vpop.permute.xlu1 %479  ;;  %v719_v43 = vadd.f32 %v718_v32, %v1728_v0  ;;  %v725_v59 = vadd.f32 %v724_v35, %v1722_v48 }
 0x141   : > { %v756_v7 = vpop.f32.mrf.mxu0  ;;  %v862_v40 = vmax.f32 %v735_v3, 0.0 }
 0x142   : > { %v757_v12 = vadd.f32 %v756_v7, %v1714_v44  ;;  %v870_v1 = vmax.f32 %v755_v11, 0.0  ;;  %v869_v7 = vmax.f32 %v753_v13, 0.0  ;;  %v926_v11 = vpack.c.bf16 %v868_v2, %v866_v61 }
 0x143   : > { %v758_v14 = vpop.f32.mrf.mxu0  ;;  %v865_v13 = vmax.f32 %v743_v4, 0.0  ;;  %v863_v2 = vmax.f32 %v737_v62, 0.0  ;;  %v924_v32 = vpack.c.bf16 %v864_v10, %v862_v40  ;;  %v709_v4 = vadd.f32 %v1748_v25, %v1732_v52 }
 0x144   : > { %v759_v16 = vadd.f32 %v758_v14, %v1714_v44  ;;  %v871_v19 = vmax.f32 %v757_v12, 0.0  ;;  %v867_v12 = vmax.f32 %v747_v17, 0.0  ;;  %v856_v3 = vmax.f32 %v719_v43, 0.0 }
 0x145   : > { %v762_v37 = vpop.f32.mrf.mxu0  ;;  %v713_v62 = vadd.f32 %v1752_v27, %v1726_v50  ;;  %v852_v10 = vmax.f32 %v709_v4, 0.0 }
 0x146   : > { %v872_v58 = vmax.f32 %v759_v16, 0.0  ;;  %v763_v53 = vadd.f32 %v762_v37, %v475_v21  ;;  %v927_v57 = vpack.c.bf16 %v871_v19, %v869_v7  ;;  %v925_v17 = vpack.c.bf16 %v867_v12, %v865_v13 }
 0x147   : > { %v764_v60 = vpop.f32.mrf.mxu0  ;;  %v861_v37 = vmax.f32 %v733_v54, 0.0  ;;  %v717_v7 = vadd.f32 %v1758_v30, %v1728_v0  ;;  %v857_v12 = vmax.f32 %v723_v41, 0.0  ;;  %v703_v54 = vadd.f32 %v1738_v18, %v1730_v51 }
 0x148   : > { %v928_v44 = vpack.c.bf16 %v872_v58, %v870_v1  ;;  %v765_v16 = vadd.f32 %v764_v60, %v475_v21  ;;  %v873_v15 = vmax.f32 %v763_v53, 0.0  ;;  %v860_v60 = vmax.f32 %v729_v45, 0.0 }
 0x149   : > { %v766_v14 = vpop.f32.mrf.mxu0  ;;  %v858_v1 = vmax.f32 %v725_v59, 0.0  ;;  %v923_v48 = vpack.c.bf16 %v863_v2, %v861_v37  ;;  %v705_v45 = vadd.f32 %v1742_v22, %v1730_v51  ;;  %v853_v13 = vmax.f32 %v713_v62, 0.0 }
 0x14a   : > { %v767_v55 = vadd.f32 %v766_v14, %v480_v42  ;;  %1033 = vmatprep.subr.bf16.mxu1 %v928_v44  ;;  %v874_v21 = vmax.f32 %v765_v16, 0.0 }
 0x14b   : > { %v768_v58 = vpop.f32.mrf.mxu0  ;;  %1034 = vmatpush1.bf16.msra.mxu1 %v927_v57  ;;  %v922_v61 = vpack.c.bf16 %v860_v60, %v858_v1 }
 0x14c   : > { %v875_v47 = vmax.f32 %v767_v55, 0.0  ;;  %v769_v56 = vadd.f32 %v768_v58, %v480_v42  ;;  %1035 = vmatprep.subr.bf16.mxu1 %v926_v11  ;;  %v715_v55 = vadd.f32 %v1756_v29, %v1726_v50  ;;  %v859_v42 = vmax.f32 %v727_v63, 0.0 }
 0x14d   : > { %v772_v19 = vpop.f32.mrf.mxu0  ;;  %v855_v11 = vmax.f32 %v717_v7, 0.0 }
 0x14e   : > { %v1808_v35 = vpack.c.bf16 %v875_v47, %v873_v15  ;;  %v876_v46 = vmax.f32 %v769_v56, 0.0  ;;  %v773_v38 = vadd.f32 %v772_v19, %v1787_v5  ;;  %v854_v14 = vmax.f32 %v715_v55, 0.0 }
 0x14f   : > { %v774_v53 = vpop.f32.mrf.mxu0  ;;  %1036 = vmatpush1.bf16.msra.mxu1 %v925_v17  ;;  %v921_v16 = vpack.c.bf16 %v859_v42, %v857_v12  ;;  %v849_v56 = vmax.f32 %v703_v54, 0.0 }
 0x150   : > { %v1814_v49 = vpack.c.bf16 %v876_v46, %v874_v21  ;;  %1037 = vmatprep.subr.bf16.mxu1 %v924_v32  ;;  %v775_v44 = vadd.f32 %v774_v53, %v1787_v5  ;;  %v877_v0 = vmax.f32 %v773_v38, 0.0  ;;  %v707_v5 = vadd.f32 %v1746_v24, %v1732_v52 }
 0x151   : > { %v776_v34 = vpop.f32.mrf.mxu0  ;;  %v920_v22 = vpack.c.bf16 %v856_v3, %v854_v14  ;;  %v919_v24 = vpack.c.bf16 %v855_v11, %v853_v13  ;;  %v1954_v13 = vld [vmem:[#allocation5_spill] sm:$0xff] }
 0x152   : > { %v777_v29 = vadd.f32 %v776_v34, %v1789_v8  ;;  %v878_v59 = vmax.f32 %v775_v44, 0.0  ;;  %v851_v52 = vmax.f32 %v707_v5, 0.0 }
 0x153   : > { %v778_v25 = vpop.f32.mrf.mxu0  ;;  %1038 = vmatpush1.bf16.msra.mxu1 %v923_v48 }
 0x154   : > { %v879_v30 = vmax.f32 %v777_v29, 0.0  ;;  %v779_v57 = vadd.f32 %v778_v25, %v1789_v8  ;;  %1039 = vmatprep.subr.bf16.mxu1 %v922_v61  ;;  %v850_v8 = vmax.f32 %v705_v45, 0.0  ;;  %v917_v60 = vpack.c.bf16 %v851_v52, %v849_v56 }
 0x155   : > { %v1830_v43 = vpop.f32.mrf.mxu0 }
 0x156   : > { %v1832_v50 = vpack.c.bf16 %v879_v30, %v877_v0  ;;  %v880_v27 = vmax.f32 %v779_v57, 0.0  ;;  %v918_v47 = vpack.c.bf16 %v852_v10, %v850_v8 }
 0x157   : > { %v1836_v58 = vpop.f32.mrf.mxu0  ;;  %1040 = vmatpush1.bf16.msra.mxu1 %v921_v16 }
 0x158   : > { %v1838_v40 = vpack.c.bf16 %v880_v27, %v878_v59  ;;  %1041 = vmatprep.subr.bf16.mxu1 %v920_v22 }
 0x159   : > { %v1840_v15 = vpop.f32.mrf.mxu0 }
 0x15b   : > { %v1842_v63 = vpop.f32.mrf.mxu0  ;;  %1042 = vmatpush1.bf16.msra.mxu1 %v919_v24 }
 0x15c   : > { %1043 = vmatprep.subr.bf16.mxu1 %v918_v47 }
 0x15d   : > { %v1844_v51 = vpop.f32.mrf.mxu0 }
 0x15f   : > { %v1846_v18 = vpop.f32.mrf.mxu0  ;;  %1044 = vmatpush1.bf16.msra.mxu1 %v917_v60 }
 0x160   : > { %1045 = vmatprep.subr.bf16.mxu1 %v1744_v23 }
 0x161   : > { %v1849_v2 = vpop.f32.mrf.mxu0 }
 0x163   : > { %v798_v17 = vpop.f32.mrf.mxu0  ;;  %1046 = vmatpush1.bf16.msra.mxu1 %v1740_v20 }
 0x164   : > { %1047 = vmatprep.subr.bf16.mxu1 %v1736_v9 }
 0x165   : > { %v802_v19 = vpop.f32.mrf.mxu0 }
 0x167   : > { %v804_v32 = vpop.f32.mrf.mxu0  ;;  %1048 = vmatpush1.bf16.msra.mxu1 %v1734_v6 }
 0x169   : > { %v806_v21 = vpop.f32.mrf.mxu0 }
 0x16b   : > { %v808_v46 = vpop.f32.mrf.mxu0 }
 0x16d   : > { %v812_v41 = vpop.f32.mrf.mxu0 }
 0x16e   : > { %v813_v27 = vadd.f32 %v812_v41, %v1766_v36 }
 0x16f   : > { %v814_v37 = vpop.f32.mrf.mxu0 }
 0x170   : > { %v815_v57 = vadd.f32 %v814_v37, %v1766_v36 }
 0x171   : > { %v816_v53 = vpop.f32.mrf.mxu0 }
 0x172   : > { %v817_v10 = vadd.f32 %v816_v53, %v1773_v39  ;;  %v894_v8 = vmax.f32 %v815_v57, 0.0  ;;  %v893_v53 = vmax.f32 %v813_v27, 0.0  ;;  %v961_v57 = vpop.permute.xlu1 %960 }
 0x173   : > { %v818_v55 = vpop.f32.mrf.mxu0 }
 0x174   : > { %v819_v62 = vadd.f32 %v818_v55, %v1773_v39  ;;  %v895_v24 = vmax.f32 %v817_v10, 0.0  ;;  %v1955_v39 = vld [vmem:[#allocation8_spill] sm:$0xff]  ;;  %v1956_v55 = vld [vmem:[#allocation7_spill] sm:$0xff] }
 0x175   : > { %v822_v1 = vpop.f32.mrf.mxu0  ;;  %v799_v56 = vadd.f32 %v798_v17, %v1955_v39  ;;  %v795_v36 = vadd.f32 %v1846_v18, %v1956_v55 }
 0x176   : > { %v823_v0 = vadd.f32 %v822_v1, %v1760_v31 }
 0x177   : > { %v824_v38 = vpop.f32.mrf.mxu0  ;;  %v888_v17 = vmax.f32 %v799_v56, 0.0 }
 0x178   : > { %v825_v61 = vadd.f32 %v824_v38, %v1760_v31  ;;  %v897_v54 = vmax.f32 %v823_v0, 0.0  ;;  %v805_v31 = vadd.f32 %v804_v32, %v1954_v13  ;;  %v797_v32 = vadd.f32 %v1849_v2, %v1955_v39  ;;  %v1957_v38 = vld [vmem:[#allocation10_spill] sm:$0xff] }
 0x179   : > { %v826_v23 = vpop.f32.mrf.mxu0  ;;  %v787_v2 = vadd.f32 %v1840_v15, %v1957_v38  ;;  %v1391_v15 = vld [vmem:[%s1936_s3 + $0x14] ss:$8 sps:$4 sm:$0xff]  }
 0x17a   : > { %v827_v29 = vadd.f32 %v826_v23, %v1762_v33  ;;  %v898_v5 = vmax.f32 %v825_v61, 0.0  ;;  %v890_v41 = vmax.f32 %v805_v31, 0.0  ;;  %v789_v23 = vadd.f32 %v1842_v63, %v1957_v38 }
 0x17b   : > { %v828_v4 = vpop.f32.mrf.mxu0  ;;  %v883_v61 = vmax.f32 %v787_v2, 0.0 }
 0x17c   : > { %v829_v20 = vadd.f32 %v828_v4, %v1762_v33  ;;  %v899_v11 = vmax.f32 %v827_v29, 0.0  ;;  %v896_v33 = vmax.f32 %v819_v62, 0.0  ;;  %v1399_v62 = vld [vmem:[%s1936_s3 + $0x30] ss:$8 sps:$4 sm:$0xff]  }
 0x17d   : > { %v832_v7 = vpop.f32.mrf.mxu0 }
 0x17e   : > { %v833_v6 = vadd.f32 %v832_v7, %v1750_v26  ;;  %v900_v12 = vmax.f32 %v829_v20, 0.0  ;;  %v941_v47 = vpack.c.bf16 %v899_v11, %v897_v54  ;;  %v940_v37 = vpack.c.bf16 %v896_v33, %v894_v8 }
 0x17f   : > { %v834_v42 = vpop.f32.mrf.mxu0  ;;  %v887_v20 = vmax.f32 %v797_v32, 0.0 }
 0x180   : > { %v835_v9 = vadd.f32 %v834_v42, %v1750_v26  ;;  %v901_v30 = vmax.f32 %v833_v6, 0.0  ;;  %v942_v59 = vpack.c.bf16 %v900_v12, %v898_v5  ;;  %v1958_v42 = vld [vmem:[#allocation9_spill] sm:$0xff]  ;;  %v956_v12 = vpop.permute.xlu0 %955 }
 0x181   : > { %v836_v48 = vpop.f32.mrf.mxu0  ;;  %v785_v18 = vadd.f32 %v1836_v58, %v1958_v42  ;;  %v783_v63 = vadd.f32 %v1830_v43, %v1958_v42  ;;  %v1388_v43 = vld [vmem:[%s1936_s3] ss:$8 sps:$4 sm:$0xff]  }
 0x182   : > { %v837_v34 = vadd.f32 %v836_v48, %v1754_v28  ;;  %v902_v25 = vmax.f32 %v835_v9, 0.0  ;;  %v886_v48 = vmax.f32 %v795_v36, 0.0 }
 0x183   : > { %v838_v3 = vpop.f32.mrf.mxu0  ;;  %v881_v58 = vmax.f32 %v783_v63, 0.0 }
 0x184   : > { %v839_v44 = vadd.f32 %v838_v3, %v1754_v28  ;;  %v903_v45 = vmax.f32 %v837_v34, 0.0  ;;  %v1953_v28 = vld [vmem:[#allocation6_spill] sm:$0xff]  ;;  %v884_v34 = vmax.f32 %v789_v23, 0.0  ;;  %v936_v6 = vpack.c.bf16 %v888_v17, %v886_v48  ;;  %v966_v33 = vpop.permute.xlu0 %965 }
 0x185   : > { %v809_v22 = vadd.f32 %v808_v46, %v1953_v28  ;;  %v807_v52 = vadd.f32 %v806_v21, %v1953_v28  ;;  %v803_v46 = vadd.f32 %v802_v19, %v1954_v13  ;;  %v939_v21 = vpack.c.bf16 %v895_v24, %v893_v53  ;;  %v971_v24 = vpop.permute.xlu1 %970 }
 0x186   : > { %v904_v14 = vmax.f32 %v839_v44, 0.0  ;;  %v943_v16 = vpack.c.bf16 %v903_v45, %v901_v30  ;;  %v793_v19 = vadd.f32 %v1844_v51, %v1956_v55  ;;  %v882_v51 = vmax.f32 %v785_v18, 0.0 }
 0x187   : > { %v892_v60 = vmax.f32 %v809_v22, 0.0  ;;  %v891_v1 = vmax.f32 %v807_v52, 0.0  ;;  %v889_v7 = vmax.f32 %v803_v46, 0.0  ;;  %v933_v45 = vpack.c.bf16 %v883_v61, %v881_v58 }
 0x188   : > { %v944_v26 = vpack.c.bf16 %v904_v14, %v902_v25  ;;  %v885_v3 = vmax.f32 %v793_v19, 0.0  ;;  %v934_v29 = vpack.c.bf16 %v884_v34, %v882_v51  ;;  %v976_v55 = vpop.permute.xlu0 %975 }
 0x189   : > { %v938_v4 = vpack.c.bf16 %v892_v60, %v890_v41  ;;  %v937_v9 = vpack.c.bf16 %v891_v1, %v889_v7  ;;  %v981_v17 = vpop.permute.xlu1 %980 }
 0x18a   : > { %1049 = vmatprep.subr.bf16.mxu1 %v944_v26  ;;  %v935_v44 = vpack.c.bf16 %v887_v20, %v885_v3 }
 0x18b   : > { %1050 = vmatpush2.bf16.msra.mxu1 %v943_v16 }
 0x18c   : > { %1051 = vmatprep.subr.bf16.mxu1 %v942_v59  ;;  %v986_v20 = vpop.permute.xlu0 %985 }
 0x18f   : > { %1052 = vmatpush2.bf16.msra.mxu1 %v941_v47 }
 0x190   : > { %1053 = vmatprep.subr.bf16.mxu1 %v940_v37 }
 0x193   : > { %1054 = vmatpush2.bf16.msra.mxu1 %v939_v21 }
 0x194   : > { %1055 = vmatprep.subr.bf16.mxu1 %v938_v4 }
 0x197   : > { %1056 = vmatpush2.bf16.msra.mxu1 %v937_v9 }
 0x198   : > { %1057 = vmatprep.subr.bf16.mxu1 %v936_v6 }
 0x19b   : > { %1058 = vmatpush2.bf16.msra.mxu1 %v935_v44  ;;  %v991_v44 = vpop.permute.xlu1 %990 }
 0x19c   : > { %1059 = vmatprep.subr.bf16.mxu1 %v934_v29 }
 0x19f   : > { %1060 = vmatpush2.bf16.msra.mxu1 %v933_v45 }
 0x1a0   : > { %1061 = vmatprep.subr.bf16.mxu1 %v1838_v40  ;;  %v1393_v40 = vld [vmem:[%s1936_s3 + $0x10] ss:$8 sps:$4 sm:$0xff]  }
 0x1a3   : > { %1062 = vmatpush2.bf16.msra.mxu1 %v1832_v50  ;;  %v1397_v50 = vld [vmem:[%s1936_s3 + $0x34] ss:$8 sps:$4 sm:$0xff]  }
 0x1a4   : > { %1063 = vmatprep.subr.bf16.mxu1 %v1814_v49  ;;  %v1394_v49 = vld [vmem:[%s1936_s3 + $0x24] ss:$8 sps:$4 sm:$0xff]  }
 0x1a7   : > { %1064 = vmatpush2.bf16.msra.mxu1 %v1808_v35  ;;  %v1396_v35 = vld [vmem:[%s1936_s3 + $0x20] ss:$8 sps:$4 sm:$0xff]  }
 0x1aa   : > { %1066 = vmatmul.mubr.bf16.vlgmr.msra.gmra.mxu1 %v1388_v43 }
 0x1ab   : > { %1075 = vmatprep.mubr.bf16.mxu1 %v1391_v15 }
 0x1b2   : > { %1076 = vmatmul.mubr.bf16.gmra.mxu1 %v1393_v40 }
 0x1b3   : > { %1085 = vmatprep.mubr.bf16.mxu1 %v1394_v49 }
 0x1ba   : > { %1086 = vmatmul.mubr.bf16.gmra.mxu1 %v1396_v35 }
 0x1bb   : > { %1095 = vmatprep.mubr.bf16.mxu1 %v1397_v50 }
 0x1c2   : > { %1096 = vmatmul.mubr.bf16.gmra.mxu1 %v1399_v62 }
 0x26a   : > { %v1067_v25 = vpop.f32.mrf.mxu1 }
 0x26b   : > { %v1068_v14 = vadd.f32 %v1067_v25, %v956_v12 }
 0x26c   : > { %v1069_v0 = vpop.f32.mrf.mxu1 }
 0x26d   : > { %v1070_v30 = vadd.f32 %v1069_v0, %v956_v12  ;;  %v1106_v26 = vmax.f32 %v1068_v14, 0.0 }
 0x26e   : > { %v1071_v5 = vpop.f32.mrf.mxu1 }
 0x26f   : > { %v1107_v10 = vmax.f32 %v1070_v30, 0.0  ;;  %v1072_v11 = vadd.f32 %v1071_v5, %v961_v57 }
 0x270   : > { %v1073_v16 = vpop.f32.mrf.mxu1 }
 0x271   : > { %v1324_v28 = vpack.c.bf16 %v1107_v10, %v1106_v26  ;;  %v1074_v22 = vadd.f32 %v1073_v16, %v961_v57  ;;  %v1108_v27 = vmax.f32 %v1072_v11, 0.0 }
 0x272   : > { %v1077_v59 = vpop.f32.mrf.mxu1 }
 0x273   : > { %1170 = vst [vmem:[%s1914_s30] sm:$0xff] %v1324_v28  ;;  %v1109_v54 = vmax.f32 %v1074_v22, 0.0  ;;  %v1078_v13 = vadd.f32 %v1077_v59, %v966_v33 }
 0x274   : > { %v1079_v31 = vpop.f32.mrf.mxu1 }
 0x275   : > { %v1325_v8 = vpack.c.bf16 %v1109_v54, %v1108_v27  ;;  %v1080_v52 = vadd.f32 %v1079_v31, %v966_v33  ;;  %v1110_v39 = vmax.f32 %v1078_v13, 0.0 }
 0x276   : > { %v1081_v47 = vpop.f32.mrf.mxu1 }
 0x277   : > { %1171 = vst [vmem:[%s1914_s30 + $0x8] sm:$0xff] %v1325_v8  ;;  %v1111_v56 = vmax.f32 %v1080_v52, 0.0  ;;  %v1082_v60 = vadd.f32 %v1081_v47, %v971_v24 }
 0x278   : > { %v1083_v37 = vpop.f32.mrf.mxu1 }
 0x279   : > { %v1326_v46 = vpack.c.bf16 %v1111_v56, %v1110_v39  ;;  %v1084_v53 = vadd.f32 %v1083_v37, %v971_v24  ;;  %v1112_v41 = vmax.f32 %v1082_v60, 0.0 }
 0x27a   : > { %v1087_v36 = vpop.f32.mrf.mxu1 }
 0x27b   : > { %1172 = vst [vmem:[%s1914_s30 + $0x10] sm:$0xff] %v1326_v46  ;;  %v1113_v32 = vmax.f32 %v1084_v53, 0.0  ;;  %v1088_v1 = vadd.f32 %v1087_v36, %v976_v55 }
 0x27c   : > { %v1089_v21 = vpop.f32.mrf.mxu1 }
 0x27d   : > { %v1327_v38 = vpack.c.bf16 %v1113_v32, %v1112_v41  ;;  %v1090_v23 = vadd.f32 %v1089_v21, %v976_v55  ;;  %v1114_v19 = vmax.f32 %v1088_v1, 0.0 }
 0x27e   : > { %v1091_v4 = vpop.f32.mrf.mxu1 }
 0x27f   : > { %1173 = vst [vmem:[%s1914_s30 + $0x18] sm:$0xff] %v1327_v38  ;;  %v1115_v7 = vmax.f32 %v1090_v23, 0.0  ;;  %v1092_v42 = vadd.f32 %v1091_v4, %v981_v17 }
 0x280   : > { %v1093_v18 = vpop.f32.mrf.mxu1 }
 0x281   : > { %v1328_v48 = vpack.c.bf16 %v1115_v7, %v1114_v19  ;;  %v1094_v2 = vadd.f32 %v1093_v18, %v981_v17  ;;  %v1116_v34 = vmax.f32 %v1092_v42, 0.0 }
 0x282   : > { %v1097_v9 = vpop.f32.mrf.mxu1 }
 0x283   : > { %1174 = vst [vmem:[%s1914_s30 + $0x20] sm:$0xff] %v1328_v48  ;;  %v1117_v6 = vmax.f32 %v1094_v2, 0.0  ;;  %v1098_v63 = vadd.f32 %v1097_v9, %v986_v20 }
 0x284   : > { %v1099_v3 = vpop.f32.mrf.mxu1 }
 0x285   : > { %v1329_v51 = vpack.c.bf16 %v1117_v6, %v1116_v34  ;;  %v1100_v61 = vadd.f32 %v1099_v3, %v986_v20  ;;  %v1118_v58 = vmax.f32 %v1098_v63, 0.0 }
 0x286   : > { %v1101_v29 = vpop.f32.mrf.mxu1 }
 0x287   : > { %1175 = vst [vmem:[%s1914_s30 + $0x28] sm:$0xff] %v1329_v51  ;;  %v1119_v45 = vmax.f32 %v1100_v61, 0.0  ;;  %v1102_v43 = vadd.f32 %v1101_v29, %v991_v44 }
 0x288   : > { %v1103_v15 = vpop.f32.mrf.mxu1 }
 0x289   : > { %v1330_v40 = vpack.c.bf16 %v1119_v45, %v1118_v58  ;;  %v1104_v49 = vadd.f32 %v1103_v15, %v991_v44  ;;  %v1120_v35 = vmax.f32 %v1102_v43, 0.0 }
 0x28b   : > { %1176 = vst [vmem:[%s1914_s30 + $0x30] sm:$0xff] %v1330_v40  ;;  %v1121_v50 = vmax.f32 %v1104_v49, 0.0 }
 0x28d   : > { %v1331_v62 = vpack.c.bf16 %v1121_v50, %v1120_v35 }
 0x28f   : > { %1177 = vst [vmem:[%s1914_s30 + $0x38] sm:$0xff] %v1331_v62 }
 0x290 PF: > { %s16_s20 = sadd.s32 1, %s1452_s20   ;;  %s1959_s18 = smov %s1448_s19 }
 0x291   : > { %p13_p2 = scmp.ge.s32.totalorder %s16_s20, 4   ;;  %s1960_s19 = smov %s1962_s22 }
 0x293   :  { %15 = sbr.rel (!%p13_p2) target bundleno = 2 (0x2), region = 75 }
 0x298   :  { %1208 = vsyncpa [#allocation3], 1 }
 0x299   :  { %1210 = vsyncpa [#allocation3 + $0x1], 1 }

</bundles_post_ra>
